<compile_context>
chip_gen: v5e
topology: v5e:2x2
jax: 0.10.0
libtpu: 0.0.40
codegen_flags: <defaults>
</compile_context>

<pallas_src>
import jax
import jax.numpy as jnp
from jax import lax
from jax.experimental import pallas as pl
from jax.experimental.pallas import tpu as pltpu


def rnn_model_kernel(ids_ref, gold_ref, emb_ref,
                     w_ih_ref, w_hh_ref, gi_bias_ref, b_hh_n_ref,
                     w_out_ref, b_out_ref,
                     logits_ref, loss_ref, acc_ref,
                     gi_ref):
    """Single-program kernel: embed + GRU over time + linear + CE loss + accuracy.

    ids_ref   : [S*B, 1]   i32  token ids, time-major flattened (index = t*B + b)
    gold_ref  : [B, 1]     i32
    emb_ref   : [V, E]     f32  embedding table
    w_ih_ref  : [E, 3*HP]  f32  input->gate weights, gate blocks padded to HP lanes
    w_hh_ref  : [H, 3*HP]  f32  hidden->gate weights, gate blocks padded to HP lanes
    gi_bias_ref: [1, 3*HP] f32  b_ih (all gates) + b_hh (r,z only), padded
    b_hh_n_ref: [1, HP]    f32  b_hh for the n gate (stays inside the r* term)
    w_out_ref : [H, Vp]    f32  output projection (columns padded to Vp)
    b_out_ref : [1, Vp]    f32  output bias (padded columns = -1e30)
    logits_ref: [B, Vp]    f32  out
    loss_ref  : [1, 1]     f32  out (SMEM scalar)
    acc_ref   : [1, 1]     f32  out (SMEM scalar)
    gi_ref    : [S*B, 3*HP] f32 VMEM scratch (precomputed input-gate projections)
    """
    SB = ids_ref.shape[0]
    V_emb, E = emb_ref.shape
    H = w_hh_ref.shape[0]
    HP = b_hh_n_ref.shape[1]
    Vp = w_out_ref.shape[1]
    B = gold_ref.shape[0]
    S = SB // B

    # ---- Embedding gather (exact one-hot matmul) + hoisted input projection ----
    ids = ids_ref[...]                                                # [S*B, 1] i32
    vocab_iota = lax.broadcasted_iota(jnp.int32, (SB, V_emb), 1)
    onehot = (vocab_iota == ids).astype(jnp.float32)                  # [S*B, V]
    embs = jnp.dot(onehot, emb_ref[...],
                   preferred_element_type=jnp.float32)                # [S*B, E]
    gi_ref[...] = (jnp.dot(embs, w_ih_ref[...],
                           preferred_element_type=jnp.float32)
                   + gi_bias_ref[...])                                # [S*B, 3*HP]

    # ---- Recurrence: only h @ W_hh remains on the serial path ----
    w_hh = w_hh_ref[...]                                              # [H, 3*HP]
    b_hh_n = jnp.broadcast_to(b_hh_n_ref[...], (B, HP))               # hoisted broadcast

    h = jnp.zeros((B, HP), dtype=jnp.float32)                         # padded hidden state
    for t in range(S):                                                # static unroll
        gi_t = gi_ref[t * B:(t + 1) * B, :]                           # aligned block load
        gh = jnp.dot(h[:, :H], w_hh,
                     preferred_element_type=jnp.float32)              # [B, 3*HP]
        r = jax.nn.sigmoid(gi_t[:, 0 * HP:1 * HP] + gh[:, 0 * HP:1 * HP])
        z = jax.nn.sigmoid(gi_t[:, 1 * HP:2 * HP] + gh[:, 1 * HP:2 * HP])
        n = jnp.tanh(gi_t[:, 2 * HP:3 * HP] + r * (gh[:, 2 * HP:3 * HP] + b_hh_n))
        h = (1.0 - z) * n + z * h

    # ---- Output projection (lane-dense logits) ----
    logits = (jnp.dot(h[:, :H], w_out_ref[...],
                      preferred_element_type=jnp.float32)
              + b_out_ref[...])                                       # [B, Vp]
    logits_ref[...] = logits

    # ---- Cross-entropy (mean) + accuracy ----
    gold = gold_ref[...]                                              # [B, 1] i32
    lane_idx = lax.broadcasted_iota(jnp.int32, (B, Vp), 1)

    m = jnp.max(logits, axis=-1, keepdims=True)                       # [B, 1]
    lse = m + jnp.log(jnp.sum(jnp.exp(logits - m), axis=-1, keepdims=True))
    onehot_gold = (lane_idx == gold).astype(jnp.float32)
    gold_logit = jnp.sum(logits * onehot_gold, axis=-1, keepdims=True)
    loss_ref[0, 0] = jnp.mean(lse - gold_logit)

    is_max = logits == m
    pred = jnp.min(jnp.where(is_max, lane_idx, Vp), axis=-1, keepdims=True)
    acc_ref[0, 0] = jnp.mean((pred == gold).astype(jnp.float32))


def _round_up(a, m):
    return ((a + m - 1) // m) * m


def rnn_model_forward(x, gold, params):
    """x: [B, S] int32 token ids, gold: [B] int32 labels. Returns (loss, acc, logits)."""
    B, S = x.shape
    emb_table = params["emb"]                 # [V, E]
    V, E = emb_table.shape
    H = params["w_hh"].shape[0]
    HP = _round_up(H, 128)                    # padded per-gate lane width
    Vp = _round_up(V, 128)                    # lane-dense logits

    w_ih, w_hh = params["w_ih"], params["w_hh"]          # [E,3H], [H,3H]
    b_ih, b_hh = params["b_ih"], params["b_hh"]          # [1,3H]
    w_out, b_out = params["w_out"], params["b_out"]      # [H,V], [1,V]

    def pad_gate_cols(a):                     # [R, 3H] -> [R, 3*HP], zero pad per gate
        blocks = []
        for g in range(3):
            blk = a[:, g * H:(g + 1) * H]
            blocks.append(jnp.pad(blk, ((0, 0), (0, HP - H))))
        return jnp.concatenate(blocks, axis=-1)

    w_ih_p = pad_gate_cols(w_ih.astype(jnp.float32))                  # [E, 3*HP]
    w_hh_p = pad_gate_cols(w_hh.astype(jnp.float32))                  # [H, 3*HP]

    # Fold b_ih (all gates) + b_hh (r,z) into the precomputed input projection.
    b_hh_rz = b_hh.at[:, 2 * H:].set(0.0)
    gi_bias = pad_gate_cols((b_ih + b_hh_rz).astype(jnp.float32))     # [1, 3*HP]
    b_hh_n_p = jnp.pad(b_hh[:, 2 * H:3 * H].astype(jnp.float32),
                       ((0, 0), (0, HP - H)))                         # [1, HP]

    # Output projection: pad columns to Vp; padded logit columns -> -1e30.
    w_out_p = jnp.pad(w_out.astype(jnp.float32), ((0, 0), (0, Vp - V)))
    b_out_p = jnp.pad(b_out.astype(jnp.float32), ((0, 0), (0, Vp - V)),
                      constant_values=-1e30)

    # Token ids, time-major flattened (tiny int op; float gather happens in-kernel).
    ids = jnp.transpose(x).reshape(S * B, 1).astype(jnp.int32)
    gold2d = gold.astype(jnp.int32).reshape(B, 1)

    vmem = pl.BlockSpec(memory_space=pltpu.MemorySpace.VMEM)
    smem = pl.BlockSpec(memory_space=pltpu.MemorySpace.SMEM)

    logits_p, loss, acc = pl.pallas_call(
        rnn_model_kernel,
        out_shape=(
            jax.ShapeDtypeStruct((B, Vp), jnp.float32),
            jax.ShapeDtypeStruct((1, 1), jnp.float32),
            jax.ShapeDtypeStruct((1, 1), jnp.float32),
        ),
        in_specs=[vmem] * 9,
        out_specs=(vmem, smem, smem),
        scratch_shapes=[pltpu.VMEM((S * B, 3 * HP), jnp.float32)],
    )(
        ids, gold2d, emb_table.astype(jnp.float32),
        w_ih_p, w_hh_p, gi_bias, b_hh_n_p,
        w_out_p, b_out_p,
    )
    return loss[0, 0], acc[0, 0], logits_p[:, :V]


def init_params(key, vocab, embdim, hdim):
    ks = jax.random.split(key, 7)
    scale_gru = 1.0 / jnp.sqrt(hdim)
    scale_out = 1.0 / jnp.sqrt(hdim)
    return {
        "emb":   jax.random.normal(ks[0], (vocab, embdim), jnp.float32),
        # PyTorch GRU stores weight_ih_l0 as (3H, E); we keep the transpose.
        "w_ih":  jax.random.uniform(ks[1], (embdim, 3 * hdim), jnp.float32,
                                    -scale_gru, scale_gru),
        "w_hh":  jax.random.uniform(ks[2], (hdim, 3 * hdim), jnp.float32,
                                    -scale_gru, scale_gru),
        "b_ih":  jax.random.uniform(ks[3], (1, 3 * hdim), jnp.float32,
                                    -scale_gru, scale_gru),
        "b_hh":  jax.random.uniform(ks[4], (1, 3 * hdim), jnp.float32,
                                    -scale_gru, scale_gru),
        # outlin: Linear(hdim, vocab); we keep weight.T -> [H, V]
        "w_out": jax.random.uniform(ks[5], (hdim, vocab), jnp.float32,
                                    -scale_out, scale_out),
        "b_out": jax.random.uniform(ks[6], (1, vocab), jnp.float32,
                                    -scale_out, scale_out),
    }


if __name__ == "__main__":
    VOCAB, EMBDIM, HDIM = 128, 32, 32
    B, S = 8, 8

    key = jax.random.PRNGKey(0)
    k_params, k_x, k_gold = jax.random.split(key, 3)

    params = init_params(k_params, VOCAB, EMBDIM, HDIM)
    x = jax.random.randint(k_x, (B, S), 0, VOCAB, dtype=jnp.int32)
    gold = jax.random.randint(k_gold, (B,), 0, VOCAB, dtype=jnp.int32)

    loss, acc, logits = jax.jit(rnn_model_forward)(x, gold, params)
    jax.block_until_ready((loss, acc, logits))
    print("KERNEL_OK")
</pallas_src>

<mosaic_0001>
module attributes {stable_mosaic.version = 11 : i64} {
  func.func @rnn_model_kernel(%arg0: memref<64x1xi32, #tpu.memory_space<vmem>>, %arg1: memref<8x1xi32, #tpu.memory_space<vmem>>, %arg2: memref<128x32xf32, #tpu.memory_space<vmem>>, %arg3: memref<32x384xf32, #tpu.memory_space<vmem>>, %arg4: memref<32x384xf32, #tpu.memory_space<vmem>>, %arg5: memref<1x384xf32, #tpu.memory_space<vmem>>, %arg6: memref<1x128xf32, #tpu.memory_space<vmem>>, %arg7: memref<32x128xf32, #tpu.memory_space<vmem>>, %arg8: memref<1x128xf32, #tpu.memory_space<vmem>>, %arg9: memref<8x128xf32, #tpu.memory_space<vmem>>, %arg10: memref<1x1xf32, #tpu.memory_space<smem>>, %arg11: memref<1x1xf32, #tpu.memory_space<smem>>, %arg12: memref<64x384xf32, #tpu.memory_space<vmem>>) attributes {dimension_semantics = [], scalar_prefetch = 0 : i64, scratch_operands = 1 : i64, tpu.core_type = #tpu.core_type<tc>} {
    %c0 = arith.constant 0 : index
    %c0_0 = arith.constant 0 : index
    %0 = vector.load %arg0[%c0, %c0_0] : memref<64x1xi32, #tpu.memory_space<vmem>>, vector<64x1xi32>
    %1 = tpu.iota {dimensions = array<i32: 1>} : vector<64x128xi32>
    %2 = vector.broadcast %0 : vector<64x1xi32> to vector<64x128xi32>
    %3 = arith.cmpi eq, %1, %2 : vector<64x128xi32>
    %4 = arith.extui %3 : vector<64x128xi1> to vector<64x128xi32>
    %5 = arith.sitofp %4 : vector<64x128xi32> to vector<64x128xf32>
    %c0_1 = arith.constant 0 : index
    %c0_2 = arith.constant 0 : index
    %6 = vector.load %arg2[%c0_1, %c0_2] : memref<128x32xf32, #tpu.memory_space<vmem>>, vector<128x32xf32>
    %cst = arith.constant dense<0.000000e+00> : vector<64x32xf32>
    %7 = tpu.matmul %5, %6, %cst {dimension_numbers = #tpu.dot_dimension_numbers<[1], [0], [0], [1], [0, 0, 1, 1], [], []>} : vector<64x128xf32>, vector<128x32xf32>, vector<64x32xf32> -> vector<64x32xf32>
    %c0_3 = arith.constant 0 : index
    %c0_4 = arith.constant 0 : index
    %8 = vector.load %arg3[%c0_3, %c0_4] : memref<32x384xf32, #tpu.memory_space<vmem>>, vector<32x384xf32>
    %cst_5 = arith.constant dense<0.000000e+00> : vector<64x384xf32>
    %9 = tpu.matmul %7, %8, %cst_5 {dimension_numbers = #tpu.dot_dimension_numbers<[1], [0], [0], [1], [0, 0, 1, 1], [], []>} : vector<64x32xf32>, vector<32x384xf32>, vector<64x384xf32> -> vector<64x384xf32>
    %c0_6 = arith.constant 0 : index
    %c0_7 = arith.constant 0 : index
    %10 = vector.load %arg5[%c0_6, %c0_7] : memref<1x384xf32, #tpu.memory_space<vmem>>, vector<1x384xf32>
    %11 = vector.broadcast %10 : vector<1x384xf32> to vector<64x384xf32>
    %12 = arith.addf %9, %11 : vector<64x384xf32>
    %c0_8 = arith.constant 0 : index
    %c0_9 = arith.constant 0 : index
    %13 = vector.load %arg12[%c0_8, %c0_9] : memref<64x384xf32, #tpu.memory_space<vmem>>, vector<64x384xf32>
    tpu.vector_store %arg12[%c0_8, %c0_9], %12 {strides = array<i32>} : memref<64x384xf32, #tpu.memory_space<vmem>>, vector<64x384xf32>,
    %c0_10 = arith.constant 0 : index
    %c0_11 = arith.constant 0 : index
    %14 = vector.load %arg4[%c0_10, %c0_11] : memref<32x384xf32, #tpu.memory_space<vmem>>, vector<32x384xf32>
    %c0_12 = arith.constant 0 : index
    %c0_13 = arith.constant 0 : index
    %15 = vector.load %arg6[%c0_12, %c0_13] : memref<1x128xf32, #tpu.memory_space<vmem>>, vector<1x128xf32>
    %16 = vector.shape_cast %15 : vector<1x128xf32> to vector<1x128xf32>
    %17 = vector.broadcast %16 : vector<1x128xf32> to vector<8x128xf32>
    %cst_14 = arith.constant 0.000000e+00 : f32
    %18 = vector.broadcast %cst_14 : f32 to vector<8x128xf32>
    %c0_15 = arith.constant 0 : index
    %c0_16 = arith.constant 0 : index
    %19 = vector.load %arg12[%c0_15, %c0_16] : memref<64x384xf32, #tpu.memory_space<vmem>>, vector<8x384xf32>
    %20 = vector.extract_strided_slice %18 {offsets = [0, 0], sizes = [8, 32], strides = [1, 1]} : vector<8x128xf32> to vector<8x32xf32>
    %cst_17 = arith.constant dense<0.000000e+00> : vector<8x384xf32>
    %21 = tpu.matmul %20, %14, %cst_17 {dimension_numbers = #tpu.dot_dimension_numbers<[1], [0], [0], [1], [0, 0, 1, 1], [], []>} : vector<8x32xf32>, vector<32x384xf32>, vector<8x384xf32> -> vector<8x384xf32>
    %22 = vector.extract_strided_slice %19 {offsets = [0, 0], sizes = [8, 128], strides = [1, 1]} : vector<8x384xf32> to vector<8x128xf32>
    %23 = vector.extract_strided_slice %21 {offsets = [0, 0], sizes = [8, 128], strides = [1, 1]} : vector<8x384xf32> to vector<8x128xf32>
    %24 = arith.addf %22, %23 : vector<8x128xf32>
    %25 = arith.negf %24 : vector<8x128xf32>
    %26 = math.exp %25 : vector<8x128xf32>
    %cst_18 = arith.constant 1.000000e+00 : f32
    %27 = vector.broadcast %cst_18 : f32 to vector<8x128xf32>
    %28 = arith.addf %27, %26 : vector<8x128xf32>
    %29 = arith.divf %27, %28 : vector<8x128xf32>
    %30 = vector.extract_strided_slice %19 {offsets = [0, 128], sizes = [8, 128], strides = [1, 1]} : vector<8x384xf32> to vector<8x128xf32>
    %31 = vector.extract_strided_slice %21 {offsets = [0, 128], sizes = [8, 128], strides = [1, 1]} : vector<8x384xf32> to vector<8x128xf32>
    %32 = arith.addf %30, %31 : vector<8x128xf32>
    %33 = arith.negf %32 : vector<8x128xf32>
    %34 = math.exp %33 : vector<8x128xf32>
    %cst_19 = arith.constant 1.000000e+00 : f32
    %35 = vector.broadcast %cst_19 : f32 to vector<8x128xf32>
    %36 = arith.addf %35, %34 : vector<8x128xf32>
    %37 = arith.divf %35, %36 : vector<8x128xf32>
    %38 = vector.extract_strided_slice %19 {offsets = [0, 256], sizes = [8, 128], strides = [1, 1]} : vector<8x384xf32> to vector<8x128xf32>
    %39 = vector.extract_strided_slice %21 {offsets = [0, 256], sizes = [8, 128], strides = [1, 1]} : vector<8x384xf32> to vector<8x128xf32>
    %40 = arith.addf %39, %17 : vector<8x128xf32>
    %41 = arith.mulf %29, %40 : vector<8x128xf32>
    %42 = arith.addf %38, %41 : vector<8x128xf32>
    %43 = math.tanh %42 : vector<8x128xf32>
    %cst_20 = arith.constant 1.000000e+00 : f32
    %44 = vector.broadcast %cst_20 : f32 to vector<8x128xf32>
    %45 = arith.subf %44, %37 : vector<8x128xf32>
    %46 = arith.mulf %45, %43 : vector<8x128xf32>
    %47 = arith.mulf %37, %18 : vector<8x128xf32>
    %48 = arith.addf %46, %47 : vector<8x128xf32>
    %c8 = arith.constant 8 : index
    %c0_21 = arith.constant 0 : index
    %49 = vector.load %arg12[%c8, %c0_21] : memref<64x384xf32, #tpu.memory_space<vmem>>, vector<8x384xf32>
    %50 = vector.extract_strided_slice %48 {offsets = [0, 0], sizes = [8, 32], strides = [1, 1]} : vector<8x128xf32> to vector<8x32xf32>
    %cst_22 = arith.constant dense<0.000000e+00> : vector<8x384xf32>
    %51 = tpu.matmul %50, %14, %cst_22 {dimension_numbers = #tpu.dot_dimension_numbers<[1], [0], [0], [1], [0, 0, 1, 1], [], []>} : vector<8x32xf32>, vector<32x384xf32>, vector<8x384xf32> -> vector<8x384xf32>
    %52 = vector.extract_strided_slice %49 {offsets = [0, 0], sizes = [8, 128], strides = [1, 1]} : vector<8x384xf32> to vector<8x128xf32>
    %53 = vector.extract_strided_slice %51 {offsets = [0, 0], sizes = [8, 128], strides = [1, 1]} : vector<8x384xf32> to vector<8x128xf32>
    %54 = arith.addf %52, %53 : vector<8x128xf32>
    %55 = arith.negf %54 : vector<8x128xf32>
    %56 = math.exp %55 : vector<8x128xf32>
    %cst_23 = arith.constant 1.000000e+00 : f32
    %57 = vector.broadcast %cst_23 : f32 to vector<8x128xf32>
    %58 = arith.addf %57, %56 : vector<8x128xf32>
    %59 = arith.divf %57, %58 : vector<8x128xf32>
    %60 = vector.extract_strided_slice %49 {offsets = [0, 128], sizes = [8, 128], strides = [1, 1]} : vector<8x384xf32> to vector<8x128xf32>
    %61 = vector.extract_strided_slice %51 {offsets = [0, 128], sizes = [8, 128], strides = [1, 1]} : vector<8x384xf32> to vector<8x128xf32>
    %62 = arith.addf %60, %61 : vector<8x128xf32>
    %63 = arith.negf %62 : vector<8x128xf32>
    %64 = math.exp %63 : vector<8x128xf32>
    %cst_24 = arith.constant 1.000000e+00 : f32
    %65 = vector.broadcast %cst_24 : f32 to vector<8x128xf32>
    %66 = arith.addf %65, %64 : vector<8x128xf32>
    %67 = arith.divf %65, %66 : vector<8x128xf32>
    %68 = vector.extract_strided_slice %49 {offsets = [0, 256], sizes = [8, 128], strides = [1, 1]} : vector<8x384xf32> to vector<8x128xf32>
    %69 = vector.extract_strided_slice %51 {offsets = [0, 256], sizes = [8, 128], strides = [1, 1]} : vector<8x384xf32> to vector<8x128xf32>
    %70 = arith.addf %69, %17 : vector<8x128xf32>
    %71 = arith.mulf %59, %70 : vector<8x128xf32>
    %72 = arith.addf %68, %71 : vector<8x128xf32>
    %73 = math.tanh %72 : vector<8x128xf32>
    %cst_25 = arith.constant 1.000000e+00 : f32
    %74 = vector.broadcast %cst_25 : f32 to vector<8x128xf32>
    %75 = arith.subf %74, %67 : vector<8x128xf32>
    %76 = arith.mulf %75, %73 : vector<8x128xf32>
    %77 = arith.mulf %67, %48 : vector<8x128xf32>
    %78 = arith.addf %76, %77 : vector<8x128xf32>
    %c16 = arith.constant 16 : index
    %c0_26 = arith.constant 0 : index
    %79 = vector.load %arg12[%c16, %c0_26] : memref<64x384xf32, #tpu.memory_space<vmem>>, vector<8x384xf32>
    %80 = vector.extract_strided_slice %78 {offsets = [0, 0], sizes = [8, 32], strides = [1, 1]} : vector<8x128xf32> to vector<8x32xf32>
    %cst_27 = arith.constant dense<0.000000e+00> : vector<8x384xf32>
    %81 = tpu.matmul %80, %14, %cst_27 {dimension_numbers = #tpu.dot_dimension_numbers<[1], [0], [0], [1], [0, 0, 1, 1], [], []>} : vector<8x32xf32>, vector<32x384xf32>, vector<8x384xf32> -> vector<8x384xf32>
    %82 = vector.extract_strided_slice %79 {offsets = [0, 0], sizes = [8, 128], strides = [1, 1]} : vector<8x384xf32> to vector<8x128xf32>
    %83 = vector.extract_strided_slice %81 {offsets = [0, 0], sizes = [8, 128], strides = [1, 1]} : vector<8x384xf32> to vector<8x128xf32>
    %84 = arith.addf %82, %83 : vector<8x128xf32>
    %85 = arith.negf %84 : vector<8x128xf32>
    %86 = math.exp %85 : vector<8x128xf32>
    %cst_28 = arith.constant 1.000000e+00 : f32
    %87 = vector.broadcast %cst_28 : f32 to vector<8x128xf32>
    %88 = arith.addf %87, %86 : vector<8x128xf32>
    %89 = arith.divf %87, %88 : vector<8x128xf32>
    %90 = vector.extract_strided_slice %79 {offsets = [0, 128], sizes = [8, 128], strides = [1, 1]} : vector<8x384xf32> to vector<8x128xf32>
    %91 = vector.extract_strided_slice %81 {offsets = [0, 128], sizes = [8, 128], strides = [1, 1]} : vector<8x384xf32> to vector<8x128xf32>
    %92 = arith.addf %90, %91 : vector<8x128xf32>
    %93 = arith.negf %92 : vector<8x128xf32>
    %94 = math.exp %93 : vector<8x128xf32>
    %cst_29 = arith.constant 1.000000e+00 : f32
    %95 = vector.broadcast %cst_29 : f32 to vector<8x128xf32>
    %96 = arith.addf %95, %94 : vector<8x128xf32>
    %97 = arith.divf %95, %96 : vector<8x128xf32>
    %98 = vector.extract_strided_slice %79 {offsets = [0, 256], sizes = [8, 128], strides = [1, 1]} : vector<8x384xf32> to vector<8x128xf32>
    %99 = vector.extract_strided_slice %81 {offsets = [0, 256], sizes = [8, 128], strides = [1, 1]} : vector<8x384xf32> to vector<8x128xf32>
    %100 = arith.addf %99, %17 : vector<8x128xf32>
    %101 = arith.mulf %89, %100 : vector<8x128xf32>
    %102 = arith.addf %98, %101 : vector<8x128xf32>
    %103 = math.tanh %102 : vector<8x128xf32>
    %cst_30 = arith.constant 1.000000e+00 : f32
    %104 = vector.broadcast %cst_30 : f32 to vector<8x128xf32>
    %105 = arith.subf %104, %97 : vector<8x128xf32>
    %106 = arith.mulf %105, %103 : vector<8x128xf32>
    %107 = arith.mulf %97, %78 : vector<8x128xf32>
    %108 = arith.addf %106, %107 : vector<8x128xf32>
    %c24 = arith.constant 24 : index
    %c0_31 = arith.constant 0 : index
    %109 = vector.load %arg12[%c24, %c0_31] : memref<64x384xf32, #tpu.memory_space<vmem>>, vector<8x384xf32>
    %110 = vector.extract_strided_slice %108 {offsets = [0, 0], sizes = [8, 32], strides = [1, 1]} : vector<8x128xf32> to vector<8x32xf32>
    %cst_32 = arith.constant dense<0.000000e+00> : vector<8x384xf32>
    %111 = tpu.matmul %110, %14, %cst_32 {dimension_numbers = #tpu.dot_dimension_numbers<[1], [0], [0], [1], [0, 0, 1, 1], [], []>} : vector<8x32xf32>, vector<32x384xf32>, vector<8x384xf32> -> vector<8x384xf32>
    %112 = vector.extract_strided_slice %109 {offsets = [0, 0], sizes = [8, 128], strides = [1, 1]} : vector<8x384xf32> to vector<8x128xf32>
    %113 = vector.extract_strided_slice %111 {offsets = [0, 0], sizes = [8, 128], strides = [1, 1]} : vector<8x384xf32> to vector<8x128xf32>
    %114 = arith.addf %112, %113 : vector<8x128xf32>
    %115 = arith.negf %114 : vector<8x128xf32>
    %116 = math.exp %115 : vector<8x128xf32>
    %cst_33 = arith.constant 1.000000e+00 : f32
    %117 = vector.broadcast %cst_33 : f32 to vector<8x128xf32>
    %118 = arith.addf %117, %116 : vector<8x128xf32>
    %119 = arith.divf %117, %118 : vector<8x128xf32>
    %120 = vector.extract_strided_slice %109 {offsets = [0, 128], sizes = [8, 128], strides = [1, 1]} : vector<8x384xf32> to vector<8x128xf32>
    %121 = vector.extract_strided_slice %111 {offsets = [0, 128], sizes = [8, 128], strides = [1, 1]} : vector<8x384xf32> to vector<8x128xf32>
    %122 = arith.addf %120, %121 : vector<8x128xf32>
    %123 = arith.negf %122 : vector<8x128xf32>
    %124 = math.exp %123 : vector<8x128xf32>
    %cst_34 = arith.constant 1.000000e+00 : f32
    %125 = vector.broadcast %cst_34 : f32 to vector<8x128xf32>
    %126 = arith.addf %125, %124 : vector<8x128xf32>
    %127 = arith.divf %125, %126 : vector<8x128xf32>
    %128 = vector.extract_strided_slice %109 {offsets = [0, 256], sizes = [8, 128], strides = [1, 1]} : vector<8x384xf32> to vector<8x128xf32>
    %129 = vector.extract_strided_slice %111 {offsets = [0, 256], sizes = [8, 128], strides = [1, 1]} : vector<8x384xf32> to vector<8x128xf32>
    %130 = arith.addf %129, %17 : vector<8x128xf32>
    %131 = arith.mulf %119, %130 : vector<8x128xf32>
    %132 = arith.addf %128, %131 : vector<8x128xf32>
    %133 = math.tanh %132 : vector<8x128xf32>
    %cst_35 = arith.constant 1.000000e+00 : f32
    %134 = vector.broadcast %cst_35 : f32 to vector<8x128xf32>
    %135 = arith.subf %134, %127 : vector<8x128xf32>
    %136 = arith.mulf %135, %133 : vector<8x128xf32>
    %137 = arith.mulf %127, %108 : vector<8x128xf32>
    %138 = arith.addf %136, %137 : vector<8x128xf32>
    %c32 = arith.constant 32 : index
    %c0_36 = arith.constant 0 : index
    %139 = vector.load %arg12[%c32, %c0_36] : memref<64x384xf32, #tpu.memory_space<vmem>>, vector<8x384xf32>
    %140 = vector.extract_strided_slice %138 {offsets = [0, 0], sizes = [8, 32], strides = [1, 1]} : vector<8x128xf32> to vector<8x32xf32>
    %cst_37 = arith.constant dense<0.000000e+00> : vector<8x384xf32>
    %141 = tpu.matmul %140, %14, %cst_37 {dimension_numbers = #tpu.dot_dimension_numbers<[1], [0], [0], [1], [0, 0, 1, 1], [], []>} : vector<8x32xf32>, vector<32x384xf32>, vector<8x384xf32> -> vector<8x384xf32>
    %142 = vector.extract_strided_slice %139 {offsets = [0, 0], sizes = [8, 128], strides = [1, 1]} : vector<8x384xf32> to vector<8x128xf32>
    %143 = vector.extract_strided_slice %141 {offsets = [0, 0], sizes = [8, 128], strides = [1, 1]} : vector<8x384xf32> to vector<8x128xf32>
    %144 = arith.addf %142, %143 : vector<8x128xf32>
    %145 = arith.negf %144 : vector<8x128xf32>
    %146 = math.exp %145 : vector<8x128xf32>
    %cst_38 = arith.constant 1.000000e+00 : f32
    %147 = vector.broadcast %cst_38 : f32 to vector<8x128xf32>
    %148 = arith.addf %147, %146 : vector<8x128xf32>
    %149 = arith.divf %147, %148 : vector<8x128xf32>
    %150 = vector.extract_strided_slice %139 {offsets = [0, 128], sizes = [8, 128], strides = [1, 1]} : vector<8x384xf32> to vector<8x128xf32>
    %151 = vector.extract_strided_slice %141 {offsets = [0, 128], sizes = [8, 128], strides = [1, 1]} : vector<8x384xf32> to vector<8x128xf32>
    %152 = arith.addf %150, %151 : vector<8x128xf32>
    %153 = arith.negf %152 : vector<8x128xf32>
    %154 = math.exp %153 : vector<8x128xf32>
    %cst_39 = arith.constant 1.000000e+00 : f32
    %155 = vector.broadcast %cst_39 : f32 to vector<8x128xf32>
    %156 = arith.addf %155, %154 : vector<8x128xf32>
    %157 = arith.divf %155, %156 : vector<8x128xf32>
    %158 = vector.extract_strided_slice %139 {offsets = [0, 256], sizes = [8, 128], strides = [1, 1]} : vector<8x384xf32> to vector<8x128xf32>
    %159 = vector.extract_strided_slice %141 {offsets = [0, 256], sizes = [8, 128], strides = [1, 1]} : vector<8x384xf32> to vector<8x128xf32>
    %160 = arith.addf %159, %17 : vector<8x128xf32>
    %161 = arith.mulf %149, %160 : vector<8x128xf32>
    %162 = arith.addf %158, %161 : vector<8x128xf32>
    %163 = math.tanh %162 : vector<8x128xf32>
    %cst_40 = arith.constant 1.000000e+00 : f32
    %164 = vector.broadcast %cst_40 : f32 to vector<8x128xf32>
    %165 = arith.subf %164, %157 : vector<8x128xf32>
    %166 = arith.mulf %165, %163 : vector<8x128xf32>
    %167 = arith.mulf %157, %138 : vector<8x128xf32>
    %168 = arith.addf %166, %167 : vector<8x128xf32>
    %c40 = arith.constant 40 : index
    %c0_41 = arith.constant 0 : index
    %169 = vector.load %arg12[%c40, %c0_41] : memref<64x384xf32, #tpu.memory_space<vmem>>, vector<8x384xf32>
    %170 = vector.extract_strided_slice %168 {offsets = [0, 0], sizes = [8, 32], strides = [1, 1]} : vector<8x128xf32> to vector<8x32xf32>
    %cst_42 = arith.constant dense<0.000000e+00> : vector<8x384xf32>
    %171 = tpu.matmul %170, %14, %cst_42 {dimension_numbers = #tpu.dot_dimension_numbers<[1], [0], [0], [1], [0, 0, 1, 1], [], []>} : vector<8x32xf32>, vector<32x384xf32>, vector<8x384xf32> -> vector<8x384xf32>
    %172 = vector.extract_strided_slice %169 {offsets = [0, 0], sizes = [8, 128], strides = [1, 1]} : vector<8x384xf32> to vector<8x128xf32>
    %173 = vector.extract_strided_slice %171 {offsets = [0, 0], sizes = [8, 128], strides = [1, 1]} : vector<8x384xf32> to vector<8x128xf32>
    %174 = arith.addf %172, %173 : vector<8x128xf32>
    %175 = arith.negf %174 : vector<8x128xf32>
    %176 = math.exp %175 : vector<8x128xf32>
    %cst_43 = arith.constant 1.000000e+00 : f32
    %177 = vector.broadcast %cst_43 : f32 to vector<8x128xf32>
    %178 = arith.addf %177, %176 : vector<8x128xf32>
    %179 = arith.divf %177, %178 : vector<8x128xf32>
    %180 = vector.extract_strided_slice %169 {offsets = [0, 128], sizes = [8, 128], strides = [1, 1]} : vector<8x384xf32> to vector<8x128xf32>
    %181 = vector.extract_strided_slice %171 {offsets = [0, 128], sizes = [8, 128], strides = [1, 1]} : vector<8x384xf32> to vector<8x128xf32>
    %182 = arith.addf %180, %181 : vector<8x128xf32>
    %183 = arith.negf %182 : vector<8x128xf32>
    %184 = math.exp %183 : vector<8x128xf32>
    %cst_44 = arith.constant 1.000000e+00 : f32
    %185 = vector.broadcast %cst_44 : f32 to vector<8x128xf32>
    %186 = arith.addf %185, %184 : vector<8x128xf32>
    %187 = arith.divf %185, %186 : vector<8x128xf32>
    %188 = vector.extract_strided_slice %169 {offsets = [0, 256], sizes = [8, 128], strides = [1, 1]} : vector<8x384xf32> to vector<8x128xf32>
    %189 = vector.extract_strided_slice %171 {offsets = [0, 256], sizes = [8, 128], strides = [1, 1]} : vector<8x384xf32> to vector<8x128xf32>
    %190 = arith.addf %189, %17 : vector<8x128xf32>
    %191 = arith.mulf %179, %190 : vector<8x128xf32>
    %192 = arith.addf %188, %191 : vector<8x128xf32>
    %193 = math.tanh %192 : vector<8x128xf32>
    %cst_45 = arith.constant 1.000000e+00 : f32
    %194 = vector.broadcast %cst_45 : f32 to vector<8x128xf32>
    %195 = arith.subf %194, %187 : vector<8x128xf32>
    %196 = arith.mulf %195, %193 : vector<8x128xf32>
    %197 = arith.mulf %187, %168 : vector<8x128xf32>
    %198 = arith.addf %196, %197 : vector<8x128xf32>
    %c48 = arith.constant 48 : index
    %c0_46 = arith.constant 0 : index
    %199 = vector.load %arg12[%c48, %c0_46] : memref<64x384xf32, #tpu.memory_space<vmem>>, vector<8x384xf32>
    %200 = vector.extract_strided_slice %198 {offsets = [0, 0], sizes = [8, 32], strides = [1, 1]} : vector<8x128xf32> to vector<8x32xf32>
    %cst_47 = arith.constant dense<0.000000e+00> : vector<8x384xf32>
    %201 = tpu.matmul %200, %14, %cst_47 {dimension_numbers = #tpu.dot_dimension_numbers<[1], [0], [0], [1], [0, 0, 1, 1], [], []>} : vector<8x32xf32>, vector<32x384xf32>, vector<8x384xf32> -> vector<8x384xf32>
    %202 = vector.extract_strided_slice %199 {offsets = [0, 0], sizes = [8, 128], strides = [1, 1]} : vector<8x384xf32> to vector<8x128xf32>
    %203 = vector.extract_strided_slice %201 {offsets = [0, 0], sizes = [8, 128], strides = [1, 1]} : vector<8x384xf32> to vector<8x128xf32>
    %204 = arith.addf %202, %203 : vector<8x128xf32>
    %205 = arith.negf %204 : vector<8x128xf32>
    %206 = math.exp %205 : vector<8x128xf32>
    %cst_48 = arith.constant 1.000000e+00 : f32
    %207 = vector.broadcast %cst_48 : f32 to vector<8x128xf32>
    %208 = arith.addf %207, %206 : vector<8x128xf32>
    %209 = arith.divf %207, %208 : vector<8x128xf32>
    %210 = vector.extract_strided_slice %199 {offsets = [0, 128], sizes = [8, 128], strides = [1, 1]} : vector<8x384xf32> to vector<8x128xf32>
    %211 = vector.extract_strided_slice %201 {offsets = [0, 128], sizes = [8, 128], strides = [1, 1]} : vector<8x384xf32> to vector<8x128xf32>
    %212 = arith.addf %210, %211 : vector<8x128xf32>
    %213 = arith.negf %212 : vector<8x128xf32>
    %214 = math.exp %213 : vector<8x128xf32>
    %cst_49 = arith.constant 1.000000e+00 : f32
    %215 = vector.broadcast %cst_49 : f32 to vector<8x128xf32>
    %216 = arith.addf %215, %214 : vector<8x128xf32>
    %217 = arith.divf %215, %216 : vector<8x128xf32>
    %218 = vector.extract_strided_slice %199 {offsets = [0, 256], sizes = [8, 128], strides = [1, 1]} : vector<8x384xf32> to vector<8x128xf32>
    %219 = vector.extract_strided_slice %201 {offsets = [0, 256], sizes = [8, 128], strides = [1, 1]} : vector<8x384xf32> to vector<8x128xf32>
    %220 = arith.addf %219, %17 : vector<8x128xf32>
    %221 = arith.mulf %209, %220 : vector<8x128xf32>
    %222 = arith.addf %218, %221 : vector<8x128xf32>
    %223 = math.tanh %222 : vector<8x128xf32>
    %cst_50 = arith.constant 1.000000e+00 : f32
    %224 = vector.broadcast %cst_50 : f32 to vector<8x128xf32>
    %225 = arith.subf %224, %217 : vector<8x128xf32>
    %226 = arith.mulf %225, %223 : vector<8x128xf32>
    %227 = arith.mulf %217, %198 : vector<8x128xf32>
    %228 = arith.addf %226, %227 : vector<8x128xf32>
    %c56 = arith.constant 56 : index
    %c0_51 = arith.constant 0 : index
    %229 = vector.load %arg12[%c56, %c0_51] : memref<64x384xf32, #tpu.memory_space<vmem>>, vector<8x384xf32>
    %230 = vector.extract_strided_slice %228 {offsets = [0, 0], sizes = [8, 32], strides = [1, 1]} : vector<8x128xf32> to vector<8x32xf32>
    %cst_52 = arith.constant dense<0.000000e+00> : vector<8x384xf32>
    %231 = tpu.matmul %230, %14, %cst_52 {dimension_numbers = #tpu.dot_dimension_numbers<[1], [0], [0], [1], [0, 0, 1, 1], [], []>} : vector<8x32xf32>, vector<32x384xf32>, vector<8x384xf32> -> vector<8x384xf32>
    %232 = vector.extract_strided_slice %229 {offsets = [0, 0], sizes = [8, 128], strides = [1, 1]} : vector<8x384xf32> to vector<8x128xf32>
    %233 = vector.extract_strided_slice %231 {offsets = [0, 0], sizes = [8, 128], strides = [1, 1]} : vector<8x384xf32> to vector<8x128xf32>
    %234 = arith.addf %232, %233 : vector<8x128xf32>
    %235 = arith.negf %234 : vector<8x128xf32>
    %236 = math.exp %235 : vector<8x128xf32>
    %cst_53 = arith.constant 1.000000e+00 : f32
    %237 = vector.broadcast %cst_53 : f32 to vector<8x128xf32>
    %238 = arith.addf %237, %236 : vector<8x128xf32>
    %239 = arith.divf %237, %238 : vector<8x128xf32>
    %240 = vector.extract_strided_slice %229 {offsets = [0, 128], sizes = [8, 128], strides = [1, 1]} : vector<8x384xf32> to vector<8x128xf32>
    %241 = vector.extract_strided_slice %231 {offsets = [0, 128], sizes = [8, 128], strides = [1, 1]} : vector<8x384xf32> to vector<8x128xf32>
    %242 = arith.addf %240, %241 : vector<8x128xf32>
    %243 = arith.negf %242 : vector<8x128xf32>
    %244 = math.exp %243 : vector<8x128xf32>
    %cst_54 = arith.constant 1.000000e+00 : f32
    %245 = vector.broadcast %cst_54 : f32 to vector<8x128xf32>
    %246 = arith.addf %245, %244 : vector<8x128xf32>
    %247 = arith.divf %245, %246 : vector<8x128xf32>
    %248 = vector.extract_strided_slice %229 {offsets = [0, 256], sizes = [8, 128], strides = [1, 1]} : vector<8x384xf32> to vector<8x128xf32>
    %249 = vector.extract_strided_slice %231 {offsets = [0, 256], sizes = [8, 128], strides = [1, 1]} : vector<8x384xf32> to vector<8x128xf32>
    %250 = arith.addf %249, %17 : vector<8x128xf32>
    %251 = arith.mulf %239, %250 : vector<8x128xf32>
    %252 = arith.addf %248, %251 : vector<8x128xf32>
    %253 = math.tanh %252 : vector<8x128xf32>
    %cst_55 = arith.constant 1.000000e+00 : f32
    %254 = vector.broadcast %cst_55 : f32 to vector<8x128xf32>
    %255 = arith.subf %254, %247 : vector<8x128xf32>
    %256 = arith.mulf %255, %253 : vector<8x128xf32>
    %257 = arith.mulf %247, %228 : vector<8x128xf32>
    %258 = arith.addf %256, %257 : vector<8x128xf32>
    %259 = vector.extract_strided_slice %258 {offsets = [0, 0], sizes = [8, 32], strides = [1, 1]} : vector<8x128xf32> to vector<8x32xf32>
    %c0_56 = arith.constant 0 : index
    %c0_57 = arith.constant 0 : index
    %260 = vector.load %arg7[%c0_56, %c0_57] : memref<32x128xf32, #tpu.memory_space<vmem>>, vector<32x128xf32>
    %cst_58 = arith.constant dense<0.000000e+00> : vector<8x128xf32>
    %261 = tpu.matmul %259, %260, %cst_58 {dimension_numbers = #tpu.dot_dimension_numbers<[1], [0], [0], [1], [0, 0, 1, 1], [], []>} : vector<8x32xf32>, vector<32x128xf32>, vector<8x128xf32> -> vector<8x128xf32>
    %c0_59 = arith.constant 0 : index
    %c0_60 = arith.constant 0 : index
    %262 = vector.load %arg8[%c0_59, %c0_60] : memref<1x128xf32, #tpu.memory_space<vmem>>, vector<1x128xf32>
    %263 = vector.broadcast %262 : vector<1x128xf32> to vector<8x128xf32>
    %264 = arith.addf %261, %263 : vector<8x128xf32>
    %c0_61 = arith.constant 0 : index
    %c0_62 = arith.constant 0 : index
    %265 = vector.load %arg9[%c0_61, %c0_62] : memref<8x128xf32, #tpu.memory_space<vmem>>, vector<8x128xf32>
    tpu.vector_store %arg9[%c0_61, %c0_62], %264 {strides = array<i32>} : memref<8x128xf32, #tpu.memory_space<vmem>>, vector<8x128xf32>,
    %c0_63 = arith.constant 0 : index
    %c0_64 = arith.constant 0 : index
    %266 = vector.load %arg1[%c0_63, %c0_64] : memref<8x1xi32, #tpu.memory_space<vmem>>, vector<8x1xi32>
    %267 = tpu.iota {dimensions = array<i32: 1>} : vector<8x128xi32>
    %cst_65 = arith.constant dense<0xFF800000> : vector<8xf32>
    %268 = vector.multi_reduction <maximumf>, %264, %cst_65 [1] : vector<8x128xf32> to vector<8xf32>
    %269 = vector.shape_cast %268 : vector<8xf32> to vector<8x1xf32>
    %270 = vector.broadcast %269 : vector<8x1xf32> to vector<8x128xf32>
    %271 = arith.subf %264, %270 : vector<8x128xf32>
    %272 = math.exp %271 : vector<8x128xf32>
    %cst_66 = arith.constant dense<0.000000e+00> : vector<8xf32>
    %273 = vector.multi_reduction <add>, %272, %cst_66 [1] : vector<8x128xf32> to vector<8xf32>
    %274 = vector.shape_cast %273 : vector<8xf32> to vector<8x1xf32>
    %275 = math.log %274 : vector<8x1xf32>
    %276 = arith.addf %269, %275 : vector<8x1xf32>
    %277 = vector.broadcast %266 : vector<8x1xi32> to vector<8x128xi32>
    %278 = arith.cmpi eq, %267, %277 : vector<8x128xi32>
    %279 = arith.extui %278 : vector<8x128xi1> to vector<8x128xi32>
    %280 = arith.sitofp %279 : vector<8x128xi32> to vector<8x128xf32>
    %281 = arith.mulf %264, %280 : vector<8x128xf32>
    %cst_67 = arith.constant dense<0.000000e+00> : vector<8xf32>
    %282 = vector.multi_reduction <add>, %281, %cst_67 [1] : vector<8x128xf32> to vector<8xf32>
    %283 = vector.shape_cast %282 : vector<8xf32> to vector<8x1xf32>
    %284 = arith.subf %276, %283 : vector<8x1xf32>
    %285 = vector.shape_cast %284 : vector<8x1xf32> to vector<1x8x1xf32>
    %cst_68 = arith.constant dense<0.000000e+00> : vector<1xf32>
    %286 = vector.multi_reduction <add>, %285, %cst_68 [1, 2] : vector<1x8x1xf32> to vector<1xf32>
    %287 = vector.shape_cast %286 : vector<1xf32> to vector<1x1x1xf32>
    %288 = vector.extract %287[0, 0, 0] : f32 from vector<1x1x1xf32>
    %cst_69 = arith.constant 8.000000e+00 : f32
    %289 = arith.divf %288, %cst_69 : f32
    %c0_70 = arith.constant 0 : index
    %c0_71 = arith.constant 0 : index
    %290 = memref.load %arg10[%c0_70, %c0_71] : memref<1x1xf32, #tpu.memory_space<smem>>
    memref.store %289, %arg10[%c0_70, %c0_71] : memref<1x1xf32, #tpu.memory_space<smem>>
    %291 = vector.broadcast %269 : vector<8x1xf32> to vector<8x128xf32>
    %292 = arith.cmpf oeq, %264, %291 : vector<8x128xf32>
    %c128_i32 = arith.constant 128 : i32
    %293 = vector.broadcast %c128_i32 : i32 to vector<8x128xi32>
    %294 = arith.select %292, %267, %293 : vector<8x128xi1>, vector<8x128xi32>
    %cst_72 = arith.constant dense<2147483647> : vector<8xi32>
    %295 = vector.multi_reduction <minsi>, %294, %cst_72 [1] : vector<8x128xi32> to vector<8xi32>
    %296 = vector.shape_cast %295 : vector<8xi32> to vector<8x1xi32>
    %297 = arith.cmpi eq, %296, %266 : vector<8x1xi32>
    %298 = arith.extui %297 : vector<8x1xi1> to vector<8x1xi32>
    %299 = arith.sitofp %298 : vector<8x1xi32> to vector<8x1xf32>
    %300 = vector.shape_cast %299 : vector<8x1xf32> to vector<1x8x1xf32>
    %cst_73 = arith.constant dense<0.000000e+00> : vector<1xf32>
    %301 = vector.multi_reduction <add>, %300, %cst_73 [1, 2] : vector<1x8x1xf32> to vector<1xf32>
    %302 = vector.shape_cast %301 : vector<1xf32> to vector<1x1x1xf32>
    %303 = vector.extract %302[0, 0, 0] : f32 from vector<1x1x1xf32>
    %cst_74 = arith.constant 8.000000e+00 : f32
    %304 = arith.divf %303, %cst_74 : f32
    %c0_75 = arith.constant 0 : index
    %c0_76 = arith.constant 0 : index
    %305 = memref.load %arg11[%c0_75, %c0_76] : memref<1x1xf32, #tpu.memory_space<smem>>
    memref.store %304, %arg11[%c0_75, %c0_76] : memref<1x1xf32, #tpu.memory_space<smem>>
    return
  }
}

</mosaic_0001>

<bundles_post_ra>
// kernel: rnn_model_forward.1
= control target key start
LH: loop header
LB: loop body
LE: loop exit
PB: predicated region body
PF: predicated region fallthrough
CT: control target
= control target key end

     0   :  { %17 = vsyncpa [#allocation4], 0  ;;  %s2212_s0 = inlined_call_operand.vmem [shape: s32[64,1], index: 0, kind: input, shape index: {}]   ;;  %s2213_s1 = inlined_call_operand.vmem [shape: s32[8,1], index: 1, kind: input, shape index: {}]   ;;  %s2214_s2 = inlined_call_operand.vmem [shape: f32[128,32], index: 2, kind: input, shape index: {}]   ;;  %s2215_s3 = inlined_call_operand.vmem [shape: f32[32,384], index: 3, kind: input, shape index: {}]   ;;  %s2216_s4 = inlined_call_operand.vmem [shape: f32[32,384], index: 4, kind: input, shape index: {}]   ;;  %s2217_s5 = inlined_call_operand.vmem [shape: f32[1,384], index: 5, kind: input, shape index: {}]   ;;  %s2218_s6 = inlined_call_operand.vmem [shape: f32[1,128], index: 6, kind: input, shape index: {}]   ;;  %s2219_s7 = inlined_call_operand.vmem [shape: f32[32,128], index: 7, kind: input, shape index: {}]   ;;  %s2220_s8 = inlined_call_operand.vmem [shape: f32[1,128], index: 8, kind: input, shape index: {}]   ;;  %s2221_s9 = inlined_call_operand.hbm [shape: f32[8,128], index: 9, kind: output, shape index: {0}]   ;;  %s2222_s10 = inlined_call_operand.hbm [shape: f32[1,1], index: 10, kind: output, shape index: {1}]   ;;  %s2223_s11 = inlined_call_operand.hbm [shape: f32[1,1], index: 11, kind: output, shape index: {2}]  }
   0x1   :  { %18 = vsyncpa [#allocation5], 0  ;;  %v40_v0 = vld [vmem:[%s2212_s0 + $0x10] sm:$0xff]  ;;  %v38_v1 = vld [vmem:[%s2212_s0] sm:$0xff]  ;;  %v1672_v2 = vmov 0  }
   0x2   :  { %1527 = vset.pattern.permute.xlu1 %v1672_v2  ;;  %1526 = vset.pattern.permute.xlu0 %v1672_v2  ;;  %v42_v3 = vld [vmem:[%s2212_s0 + $0x20] sm:$0xff]  ;;  %v111_v4 = vld [vmem:[%s2214_s2 + $0x78] sm:$0xff]  ;;  %v110_v5 = vld [vmem:[%s2214_s2 + $0x70] sm:$0xff] }
   0x3   :  { %55 = vperm.xlu1 %1527, %v40_v0   ;;  %49 = vperm.xlu0 %1526, %v38_v1   ;;  %v109_v6 = vld [vmem:[%s2214_s2 + $0x68] sm:$0xff]  ;;  %v41_v7 = vld [vmem:[%s2212_s0 + $0x18] sm:$0xff]  ;;  %v108_v9 = vld [vmem:[%s2214_s2 + $0x60] sm:$0xff] }
   0x4   :  { %1528 = vset.pattern.permute.xlu2 %v1672_v2  ;;  %112 = vmatpush.msra.mxu0 %v111_v4  ;;  %v39_v8 = vld [vmem:[%s2212_s0 + $0x8] sm:$0xff] }
   0x5   :  { %61 = vperm.xlu2 %1528, %v42_v3  }
   0x6   :  { %113 = vmatpush.msra.mxu0 %v110_v5 }
   0x8   :  { %114 = vmatpush.msra.mxu0 %v109_v6 }
   0x9   :  { %19 = vsyncpa [#allocation8], 0  ;;  %v43_v10 = vld [vmem:[%s2212_s0 + $0x28] sm:$0xff]  ;;  %v107_v11 = vld [vmem:[%s2214_s2 + $0x58] sm:$0xff]  ;;  %v46_v26 = vlaneseq  ;;  %v1673_v29 = vmov 1.0   ;;  %vm173_vm8 = vcmask 261120  }
   0xa   :  { %115 = vmatpush.msra.mxu0 %v108_v9  ;;  %v106_v12 = vld [vmem:[%s2214_s2 + $0x50] sm:$0xff]  ;;  %v105_v13 = vld [vmem:[%s2214_s2 + $0x48] sm:$0xff]  ;;  %v45_v14 = vld [vmem:[%s2212_s0 + $0x38] sm:$0xff]  ;;  %v1674_v5 = vmov 0.0   ;;  %s1675_s22 = smov [#allocation3]   ;;  %s1395_s26 = sshll.u32 %s2221_s9, 4  ;;  %s1396_s26 = int_to_ptr.hbm [resolvable:$true] %s1395_s26 }
   0xb   :  { %58 = vperm.xlu1 %1527, %v41_v7   ;;  %52 = vperm.xlu0 %1526, %v39_v8   ;;  %v44_v15 = vld [vmem:[%s2212_s0 + $0x30] sm:$0xff]  ;;  %v104_v16 = vld [vmem:[%s2214_s2 + $0x40] sm:$0xff]  ;;  %v103_v17 = vld [vmem:[%s2214_s2 + $0x38] sm:$0xff]  ;;  %v1814_v27 = vand.u32 127, %v46_v26  ;;  %s1393_s23 = sshll.u32 %s1675_s22, 4  ;;  %s1404_s27 = sshll.u32 %s2222_s10, 4  ;;  %s1394_s23 = int_to_ptr.vmem [resolvable:$true] %s1393_s23  ;;  %s1405_s27 = int_to_ptr.hbm [resolvable:$true] %s1404_s27 }
   0xc   :  { %116 = vmatpush.msra.mxu0 %v107_v11  ;;  %v102_v18 = vld [vmem:[%s2214_s2 + $0x30] sm:$0xff]  ;;  %v101_v19 = vld [vmem:[%s2214_s2 + $0x28] sm:$0xff]  ;;  %v1305_v20 = vld [vmem:[%s2213_s1] sm:$0xff]  ;;  %s1413_s30 = sshll.u32 %s2223_s11, 4  ;;  %s1677_s14 = smov [#allocation6]   ;;  %s1414_s30 = int_to_ptr.hbm [resolvable:$true] %s1413_s30 }
   0xd   :  { %64 = vperm.xlu2 %1528, %v43_v10   ;;  %v100_v21 = vld [vmem:[%s2214_s2 + $0x20] sm:$0xff]  ;;  %v99_v22 = vld [vmem:[%s2214_s2 + $0x18] sm:$0xff]  ;;  %v98_v23 = vld [vmem:[%s2214_s2 + $0x10] sm:$0xff] }
   0xe   :  { %117 = vmatpush.msra.mxu0 %v106_v12  ;;  %v97_v24 = vld [vmem:[%s2214_s2 + $0x8] sm:$0xff]  ;;  %v96_v25 = vld [vmem:[%s2214_s2] sm:$0xff]  ;;  %v163_v34 = vld [vmem:[%s2215_s3 + $0x50] sm:$0xff] }
   0xf   :  { %v162_v33 = vld [vmem:[%s2215_s3 + $0x48] sm:$0xff]  ;;  %v164_v35 = vld [vmem:[%s2215_s3 + $0x58] sm:$0xff]  ;;  %251 = vmatpush.msra.mxu2 %v163_v34  ;;  %v159_v36 = vld [vmem:[%s2215_s3 + $0x30] sm:$0xff] }
  0x10   :  { %118 = vmatpush.msra.mxu0 %v105_v13  ;;  %210 = vmatpush.msra.mxu1 %v162_v33  ;;  %v160_v37 = vld [vmem:[%s2215_s3 + $0x38] sm:$0xff]  ;;  %v161_v38 = vld [vmem:[%s2215_s3 + $0x40] sm:$0xff]  ;;  %v158_v42 = vld [vmem:[%s2215_s3 + $0x28] sm:$0xff] }
  0x11   :  { %292 = vmatpush.msra.mxu3 %v164_v35  ;;  %v156_v40 = vld [vmem:[%s2215_s3 + $0x18] sm:$0xff]  ;;  %v157_v41 = vld [vmem:[%s2215_s3 + $0x20] sm:$0xff]  ;;  %252 = vmatpush.msra.mxu2 %v160_v37  ;;  %v154_v47 = vld [vmem:[%s2215_s3 + $0x8] sm:$0xff] }
  0x12   :  { %119 = vmatpush.msra.mxu0 %v104_v16  ;;  %211 = vmatpush.msra.mxu1 %v159_v36  ;;  %v153_v46 = vld [vmem:[%s2215_s3] sm:$0xff]  ;;  %v155_v48 = vld [vmem:[%s2215_s3 + $0x10] sm:$0xff]  ;;  %v1863_v49 = vld [vmem:[%s2216_s4 + $0x48] sm:$0xff] }
  0x13   :  { %70 = vperm.xlu1 %1527, %v45_v14   ;;  %67 = vperm.xlu0 %1526, %v44_v15   ;;  %v1868_v50 = vld [vmem:[%s2216_s4 + $0x50] sm:$0xff]  ;;  %v1881_v52 = vld [vmem:[%s2216_s4 + $0x38] sm:$0xff]  ;;  %v1903_v56 = vld [vmem:[%s2216_s4 + $0x20] sm:$0xff] }
  0x14   :  { %120 = vmatpush.msra.mxu0 %v103_v17  ;;  %293 = vmatpush.msra.mxu3 %v161_v38  ;;  %v1876_v51 = vld [vmem:[%s2216_s4 + $0x30] sm:$0xff]  ;;  %v1886_v53 = vld [vmem:[%s2216_s4 + $0x58] sm:$0xff]  ;;  %v1908_v57 = vld [vmem:[%s2216_s4 + $0x40] sm:$0xff] }
  0x15   :  { %212 = vmatpush.msra.mxu1 %v156_v40  ;;  %253 = vmatpush.msra.mxu2 %v157_v41  ;;  %v1898_v55 = vld [vmem:[%s2216_s4 + $0x18] sm:$0xff]  ;;  %v1923_v60 = vld [vmem:[%s2216_s4] sm:$0xff]  ;;  %v1928_v61 = vld [vmem:[%s2216_s4 + $0x8] sm:$0xff] }
  0x16   :  { %121 = vmatpush.msra.mxu0 %v102_v18  ;;  %294 = vmatpush.msra.mxu3 %v158_v42  ;;  %v1933_v62 = vld [vmem:[%s2216_s4 + $0x28] sm:$0xff]  ;;  %v1959_v1 = vld [vmem:[%s2216_s4 + $0x10] sm:$0xff]  ;;  %v165_v7 = vld [vmem:[%s2217_s5] sm:$0x7] }
  0x17   :  { %213 = vmatpush.msra.mxu1 %v153_v46  ;;  %254 = vmatpush.msra.mxu2 %v154_v47  ;;  %v167_v9 = vperm.slane %v165_v7, 0  ;;  %v168_v13 = vperm.slane %v165_v7, 1  ;;  %v1998_v14 = vperm.slane %v165_v7, 2 }
  0x18   :  { %122 = vmatpush.msra.mxu0 %v101_v19  ;;  %295 = vmatpush.msra.mxu3 %v155_v48 }
  0x19   :  { %379 = vmatpush.msrb.mxu1 %v1863_v49  ;;  %399 = vmatpush.msrb.mxu2 %v1868_v50 }
  0x1a   :  { %123 = vmatpush.msra.mxu0 %v100_v21  ;;  %419 = vmatpush.msrb.mxu3 %v1886_v53 }
  0x1b   :  { %1317 = vperm.xlu1 %1527, %v1305_v20   ;;  %380 = vmatpush.msrb.mxu1 %v1876_v51 }
  0x1c   :  { %124 = vmatpush.msra.mxu0 %v99_v22  ;;  %400 = vmatpush.msrb.mxu2 %v1881_v52 }
  0x1d   :  { %381 = vmatpush.msrb.mxu1 %v1898_v55  ;;  %420 = vmatpush.msrb.mxu3 %v1908_v57 }
  0x1e   :  { %125 = vmatpush.msra.mxu0 %v98_v23  ;;  %401 = vmatpush.msrb.mxu2 %v1903_v56 }
  0x1f   :  { %382 = vmatpush.msrb.mxu1 %v1923_v60  ;;  %421 = vmatpush.msrb.mxu3 %v1933_v62 }
  0x20   :  { %126 = vmatpush.msra.mxu0 %v97_v24  ;;  %402 = vmatpush.msrb.mxu2 %v1928_v61 }
  0x21   :  { %422 = vmatpush.msrb.mxu3 %v1959_v1 }
  0x22   :  { %127 = vmatpush.msra.mxu0 %v96_v25 }
  0x24   :  { %721 = vmatpush.msrb.mxu0 %v1863_v49 }
  0x26   :  { %722 = vmatpush.msrb.mxu0 %v1876_v51 }
  0x28   :  { %723 = vmatpush.msrb.mxu0 %v1898_v55 }
  0x2a   :  { %724 = vmatpush.msrb.mxu0 %v1923_v60 }
  0x5f   :  { %v62_v39 = vpop.permute.xlu2 %61 }
  0x60   :  { %vm76_vm4 = vcmp.eq.s32.totalorder %v1814_v27, %v62_v39 }
  0x67   :  { %v65_v43 = vpop.permute.xlu2 %64 }
  0x68   :  { %vm77_vm5 = vcmp.eq.s32.totalorder %v1814_v27, %v65_v43 }
  0x75   :  { %v50_v28 = vpop.permute.xlu0 %49  ;;  %v56_v31 = vpop.permute.xlu1 %55 }
  0x76   :  { %vm72_vm0 = vcmp.eq.s32.totalorder %v1814_v27, %v50_v28  ;;  %vm74_vm2 = vcmp.eq.s32.totalorder %v1814_v27, %v56_v31 }
  0x77   :  { %1441 = vmatmul.msk.f32.vlgmr.msra.gmra.mxu0 %vm72_vm0, %v1673_v29 }
  0x78   :  { %855 = vmatpush.msra.mxu0 %v1868_v50 }
  0x7a   :  { %856 = vmatpush.msra.mxu0 %v1881_v52 }
  0x7c   :  { %857 = vmatpush.msra.mxu0 %v1903_v56 }
  0x7d   :  { %v53_v30 = vpop.permute.xlu0 %52  ;;  %v59_v32 = vpop.permute.xlu1 %58 }
  0x7e   :  { %vm73_vm1 = vcmp.eq.s32.totalorder %v1814_v27, %v53_v30  ;;  %vm75_vm3 = vcmp.eq.s32.totalorder %v1814_v27, %v59_v32  ;;  %858 = vmatpush.msra.mxu0 %v1928_v61 }
  0x7f   :  { %1442 = vmatmul.msk.f32.gmra.mxu0 %vm73_vm1, %v1673_v29 }
  0x85   :  { %v68_v44 = vpop.permute.xlu0 %67  ;;  %v71_v45 = vpop.permute.xlu1 %70 }
  0x86   :  { %vm78_vm6 = vcmp.eq.s32.totalorder %v1814_v27, %v68_v44  ;;  %vm79_vm7 = vcmp.eq.s32.totalorder %v1814_v27, %v71_v45 }
  0x87   :  { %1443 = vmatmul.msk.f32.gmra.mxu0 %vm74_vm2, %v1673_v29 }
  0x8f   :  { %1444 = vmatmul.msk.f32.gmra.mxu0 %vm75_vm3, %v1673_v29 }
  0x97   :  { %1445 = vmatmul.msk.f32.gmra.mxu0 %vm76_vm4, %v1673_v29 }
  0x9f   :  { %1446 = vmatmul.msk.f32.gmra.mxu0 %vm77_vm5, %v1673_v29 }
  0xa7   :  { %1447 = vmatmul.msk.f32.gmra.mxu0 %vm78_vm6, %v1673_v29 }
  0xaf   :  { %1448 = vmatmul.msk.f32.gmra.mxu0 %vm79_vm7, %v1673_v29 }
  0xf4   :  { %v129_v54 = vpop.f32.mrf.mxu0 }
  0xf5   :  { %1449 = vmatmul.msk.f32.vlgmr.msra.gmra.mxu1 %vm173_vm8, %v129_v54  ;;  %1457 = vmatmul.msk.f32.vlgmr.msra.gmra.mxu2 %vm173_vm8, %v129_v54 }
  0xf6   :  { %1465 = vmatmul.msk.f32.vlgmr.msra.gmra.mxu3 %vm173_vm8, %v129_v54  ;;  %493 = vmatpush.msra.mxu1 %v1863_v49 }
  0xf7   :  { %513 = vmatpush.msra.mxu2 %v1868_v50  ;;  %533 = vmatpush.msra.mxu3 %v1886_v53 }
  0xf8   :  { %494 = vmatpush.msra.mxu1 %v1876_v51 }
  0xf9   :  { %514 = vmatpush.msra.mxu2 %v1881_v52  ;;  %534 = vmatpush.msra.mxu3 %v1908_v57 }
  0xfa   :  { %495 = vmatpush.msra.mxu1 %v1898_v55 }
  0xfb   :  { %515 = vmatpush.msra.mxu2 %v1903_v56  ;;  %535 = vmatpush.msra.mxu3 %v1933_v62 }
  0xfc   :  { %v132_v58 = vpop.f32.mrf.mxu0  ;;  %496 = vmatpush.msra.mxu1 %v1923_v60 }
  0xfd   :  { %1450 = vmatmul.msk.f32.gmra.mxu1 %vm173_vm8, %v132_v58  ;;  %1458 = vmatmul.msk.f32.gmra.mxu2 %vm173_vm8, %v132_v58 }
  0xfe   :  { %1466 = vmatmul.msk.f32.gmra.mxu3 %vm173_vm8, %v132_v58  ;;  %516 = vmatpush.msra.mxu2 %v1928_v61 }
  0xff   :  { %536 = vmatpush.msra.mxu3 %v1959_v1 }
 0x104   :  { %v135_v59 = vpop.f32.mrf.mxu0 }
 0x105   :  { %1451 = vmatmul.msk.f32.gmra.mxu1 %vm173_vm8, %v135_v59  ;;  %1459 = vmatmul.msk.f32.gmra.mxu2 %vm173_vm8, %v135_v59 }
 0x106   :  { %1467 = vmatmul.msk.f32.gmra.mxu3 %vm173_vm8, %v135_v59 }
 0x10c   :  { %v138_v63 = vpop.f32.mrf.mxu0 }
 0x10d   :  { %1452 = vmatmul.msk.f32.gmra.mxu1 %vm173_vm8, %v138_v63  ;;  %1460 = vmatmul.msk.f32.gmra.mxu2 %vm173_vm8, %v138_v63 }
 0x10e   :  { %1468 = vmatmul.msk.f32.gmra.mxu3 %vm173_vm8, %v138_v63 }
 0x114   :  { %v141_v0 = vpop.f32.mrf.mxu0 }
 0x115   :  { %1453 = vmatmul.msk.f32.gmra.mxu1 %vm173_vm8, %v141_v0  ;;  %1461 = vmatmul.msk.f32.gmra.mxu2 %vm173_vm8, %v141_v0 }
 0x116   :  { %1469 = vmatmul.msk.f32.gmra.mxu3 %vm173_vm8, %v141_v0 }
 0x11c   :  { %v144_v2 = vpop.f32.mrf.mxu0 }
 0x11d   :  { %1454 = vmatmul.msk.f32.gmra.mxu1 %vm173_vm8, %v144_v2  ;;  %1462 = vmatmul.msk.f32.gmra.mxu2 %vm173_vm8, %v144_v2 }
 0x11e   :  { %1470 = vmatmul.msk.f32.gmra.mxu3 %vm173_vm8, %v144_v2 }
 0x124   :  { %v147_v3 = vpop.f32.mrf.mxu0 }
 0x125   :  { %1455 = vmatmul.msk.f32.gmra.mxu1 %vm173_vm8, %v147_v3  ;;  %1463 = vmatmul.msk.f32.gmra.mxu2 %vm173_vm8, %v147_v3 }
 0x126   :  { %1471 = vmatmul.msk.f32.gmra.mxu3 %vm173_vm8, %v147_v3 }
 0x12c   :  { %v150_v4 = vpop.f32.mrf.mxu0 }
 0x12d   :  { %1456 = vmatmul.msk.f32.gmra.mxu1 %vm173_vm8, %v150_v4  ;;  %1464 = vmatmul.msk.f32.gmra.mxu2 %vm173_vm8, %v150_v4 }
 0x12e   :  { %1472 = vmatmul.msk.f32.gmra.mxu3 %vm173_vm8, %v150_v4 }
 0x135   :  { %383 = vmatmul.f32.vlgmr.msrb.gmra.mxu1 %v1674_v5  ;;  %403 = vmatmul.f32.vlgmr.msrb.gmra.mxu2 %v1674_v5 }
 0x136   :  { %423 = vmatmul.f32.vlgmr.msrb.gmra.mxu3 %v1674_v5  ;;  %607 = vmatpush.msrb.mxu1 %v1863_v49 }
 0x137   :  { %627 = vmatpush.msrb.mxu2 %v1868_v50  ;;  %647 = vmatpush.msrb.mxu3 %v1886_v53 }
 0x138   :  { %608 = vmatpush.msrb.mxu1 %v1876_v51 }
 0x139   :  { %628 = vmatpush.msrb.mxu2 %v1881_v52  ;;  %648 = vmatpush.msrb.mxu3 %v1908_v57 }
 0x13a   :  { %609 = vmatpush.msrb.mxu1 %v1898_v55 }
 0x13b   :  { %629 = vmatpush.msrb.mxu2 %v1903_v56  ;;  %649 = vmatpush.msrb.mxu3 %v1933_v62 }
 0x13c   :  { %610 = vmatpush.msrb.mxu1 %v1923_v60 }
 0x13d   :  { %630 = vmatpush.msrb.mxu2 %v1928_v61  ;;  %650 = vmatpush.msrb.mxu3 %v1959_v1 }
 0x172   :  { %v215_v6 = vpop.f32.mrf.mxu1 }
 0x173   :  { %v216_v0 = vadd.f32 %v215_v6, %v167_v9 }
 0x178   :  { %v256_v8 = vpop.f32.mrf.mxu2 }
 0x179   :  { %v1994_v10 = vpop.f32.mrf.mxu3 }
 0x17a   :  { %v218_v11 = vpop.f32.mrf.mxu1 }
 0x17b   :  { %v1996_v12 = vadd.f32 %v218_v11, %v167_v9 }
 0x180   :  { %v259_v15 = vpop.f32.mrf.mxu2 }
 0x181   :  { %v2000_v16 = vadd.f32 %v259_v15, %v168_v13  ;;  %v300_v17 = vpop.f32.mrf.mxu3 }
 0x182   :  { %v2003_v18 = vadd.f32 %v300_v17, %v1998_v14  ;;  %v221_v19 = vpop.f32.mrf.mxu1  ;;  %v257_v17 = vadd.f32 %v256_v8, %v168_v13 }
 0x183   :  { %v2005_v20 = vadd.f32 %v221_v19, %v167_v9 }
 0x188   :  { %v262_v21 = vpop.f32.mrf.mxu2 }
 0x189   :  { %v2007_v22 = vadd.f32 %v262_v21, %v168_v13  ;;  %v303_v23 = vpop.f32.mrf.mxu3 }
 0x18a   :  { %v2010_v24 = vadd.f32 %v303_v23, %v1998_v14  ;;  %v224_v25 = vpop.f32.mrf.mxu1 }
 0x18b   :  { %v2012_v26 = vadd.f32 %v224_v25, %v167_v9 }
 0x190   :  { %v265_v28 = vpop.f32.mrf.mxu2 }
 0x191   :  { %v2014_v29 = vadd.f32 %v265_v28, %v168_v13  ;;  %v306_v30 = vpop.f32.mrf.mxu3 }
 0x192   :  { %v2017_v31 = vadd.f32 %v306_v30, %v1998_v14  ;;  %v227_v32 = vpop.f32.mrf.mxu1 }
 0x193   :  { %v2019_v33 = vadd.f32 %v227_v32, %v167_v9 }
 0x198   :  { %v268_v34 = vpop.f32.mrf.mxu2 }
 0x199   :  { %v2021_v35 = vadd.f32 %v268_v34, %v168_v13  ;;  %v309_v36 = vpop.f32.mrf.mxu3  ;;  %v2050_v34 = vld [vmem:[%s2218_s6] ss:$0 sm:$0xff]  ;;  %s1678_s6 = smov [#allocation7]  }
 0x19a   :  { %v2024_v37 = vadd.f32 %v309_v36, %v1998_v14  ;;  %v230_v38 = vpop.f32.mrf.mxu1 }
 0x19b   :  { %v2026_v39 = vadd.f32 %v230_v38, %v167_v9 }
 0x1a0   :  { %v271_v40 = vpop.f32.mrf.mxu2 }
 0x1a1   :  { %v2028_v41 = vadd.f32 %v271_v40, %v168_v13  ;;  %v312_v42 = vpop.f32.mrf.mxu3 }
 0x1a2   :  { %v2031_v43 = vadd.f32 %v312_v42, %v1998_v14  ;;  %v233_v44 = vpop.f32.mrf.mxu1 }
 0x1a3   :  { %v2033_v45 = vadd.f32 %v233_v44, %v167_v9 }
 0x1a8   :  { %v274_v46 = vpop.f32.mrf.mxu2 }
 0x1a9   :  { %v2035_v47 = vadd.f32 %v274_v46, %v168_v13  ;;  %v315_v48 = vpop.f32.mrf.mxu3 }
 0x1aa   :  { %v2038_v54 = vadd.f32 %v315_v48, %v1998_v14  ;;  %v236_v58 = vpop.f32.mrf.mxu1 }
 0x1ab   :  { %v2040_v59 = vadd.f32 %v236_v58, %v167_v9 }
 0x1b0   :  { %v277_v63 = vpop.f32.mrf.mxu2 }
 0x1b1   :  { %v2042_v2 = vadd.f32 %v277_v63, %v168_v13  ;;  %v318_v3 = vpop.f32.mrf.mxu3 }
 0x1b2   :  { %v2045_v4 = vadd.f32 %v318_v3, %v1998_v14  ;;  %v384_v7 = vpop.f32.mrf.mxu1  ;;  %v298_v3 = vadd.f32 %v1994_v10, %v1998_v14 }
 0x1b3   :  { %v427_v11 = vadd.f32 %v384_v7, %v216_v0 }
 0x1b5   :  { %v1473_v15 = vmul.f32 -1.442695, %v427_v11 }
 0x1b7   :  { %1531 = vpow2.f32 %v1473_v15 }
 0x1b8   :  { %v404_v19 = vpop.f32.mrf.mxu2 }
 0x1b9   :  { %v447_v21 = vadd.f32 %v404_v19, %v257_v17  ;;  %v424_v8 = vpop.f32.mrf.mxu3 }
 0x1ba   :  { %v467_v48 = vadd.f32 %v2050_v34, %v424_v8 }
 0x1bb   :  { %v1474_v23 = vmul.f32 -1.442695, %v447_v21 }
 0x1bd   :  { %v1532_v25 = vpop.eup %1531  ;;  %1533 = vpow2.f32 %v1474_v23 }
 0x1be   :  { %v431_v28 = vadd.f32 1.0, %v1532_v25 }
 0x1c0   :  { %1535 = vrcp.f32 %v431_v28  ;;  %v443_v13 = vand.u32 2147483648, %v431_v28  ;;  %v441_v40 = vand.u32 2147483647, %v431_v28  ;;  %vm437_vm10 = vweird.f32 %v431_v28 }
 0x1c2   :  { %v444_v58 = vor.u32 1.1754944e-38, %v443_v13  ;;  %vm442_vm12 = vcmp.eq.f32.partialorder %v441_v40, 8.507059e+37 }
 0x1c3   :  { %v1534_v30 = vpop.eup %1533 }
 0x1c4   :  { %v451_v6 = vadd.f32 1.0, %v1534_v30 }
 0x1c6   :  { %v1536_v9 = vpop.eup %1535  ;;  %1537 = vrcp.f32 %v451_v6  ;;  %v463_v15 = vand.u32 2147483648, %v451_v6  ;;  %v461_v19 = vand.u32 2147483647, %v451_v6  ;;  %vm457_vm14 = vweird.f32 %v451_v6 }
 0x1c7   :  { %v433_v32 = vmul.f32 %v1536_v9, %v431_v28  ;;  %vm438_vm9 = vweird.f32 %v1536_v9 }
 0x1c8   :  { %vm439_vm11 = vmor %vm437_vm10, %vm438_vm9  ;;  %v464_v25 = vor.u32 1.1754944e-38, %v463_v15  ;;  %vm462_vm0 = vcmp.eq.f32.partialorder %v461_v19, 8.507059e+37 }
 0x1c9   :  { %v434_v36 = vsub.f32 1.0, %v433_v32 }
 0x1cb   :  { %v435_v38 = vmul.f32 %v1536_v9, %v434_v36 }
 0x1cc   :  { %v1538_v42 = vpop.eup %1537 }
 0x1cd   :  { %v453_v44 = vmul.f32 %v1538_v42, %v451_v6  ;;  %v436_v46 = vadd.f32 %v1536_v9, %v435_v38  ;;  %vm458_vm13 = vweird.f32 %v1538_v42 }
 0x1ce   :  { %vm459_vm15 = vmor %vm457_vm14, %vm458_vm13 }
 0x1cf   :  { %v454_v63 = vsub.f32 1.0, %v453_v44  ;;  %v440_v0 = vsel %vm439_vm11, %v1536_v9, %v436_v46 }
 0x1d0   :  { %v445_v7 = vsel %vm442_vm12, %v444_v58, %v440_v0 }
 0x1d1   :  { %v455_v11 = vmul.f32 %v1538_v42, %v454_v63  ;;  %v468_v17 = vmul.f32 %v467_v48, %v445_v7 }
 0x1d3   :  { %v456_v21 = vadd.f32 %v1538_v42, %v455_v11  ;;  %v469_v23 = vadd.f32 %v468_v17, %v298_v3 }
 0x1d5   :  { %v460_v28 = vsel %vm459_vm15, %v1538_v42, %v456_v21  ;;  %1539 = vtanh.f32 %v469_v23 }
 0x1d6   :  { %v465_v30 = vsel %vm462_vm0, %v464_v25, %v460_v28 }
 0x1d7   :  { %v471_v9 = vsub.f32 1.0, %v465_v30  ;;  %v473_v8 = vmul.f32 0.0, %v465_v30 }
 0x1db   :  { %v1540_v32 = vpop.eup %1539 }
 0x1dc   :  { %v472_v36 = vmul.f32 %v1540_v32, %v471_v9 }
 0x1de   :  { %v2055_v10 = vadd.f32 %v473_v8, %v472_v36 }
 0x1e0   :  { %1475 = vmatmul.msk.f32.vlgmr.msra.gmra.mxu1 %vm173_vm8, %v2055_v10  ;;  %1476 = vmatmul.msk.f32.vlgmr.msra.gmra.mxu2 %vm173_vm8, %v2055_v10 }
 0x1e1   :  { %1477 = vmatmul.msk.f32.vlgmr.msra.gmra.mxu3 %vm173_vm8, %v2055_v10  ;;  %741 = vmatpush.msra.mxu1 %v1868_v50 }
 0x1e2   :  { %761 = vmatpush.msra.mxu2 %v1886_v53  ;;  %835 = vmatpush.msra.mxu3 %v1863_v49 }
 0x1e3   :  { %742 = vmatpush.msra.mxu1 %v1881_v52 }
 0x1e4   :  { %762 = vmatpush.msra.mxu2 %v1908_v57  ;;  %836 = vmatpush.msra.mxu3 %v1876_v51 }
 0x1e5   :  { %743 = vmatpush.msra.mxu1 %v1903_v56 }
 0x1e6   :  { %763 = vmatpush.msra.mxu2 %v1933_v62  ;;  %837 = vmatpush.msra.mxu3 %v1898_v55 }
 0x1e7   :  { %744 = vmatpush.msra.mxu1 %v1928_v61 }
 0x1e8   :  { %764 = vmatpush.msra.mxu2 %v1959_v1  ;;  %838 = vmatpush.msra.mxu3 %v1923_v60 }
 0x25d   :  { %v498_v14 = vpop.f32.mrf.mxu1 }
 0x25e   :  { %v541_v6 = vadd.f32 %v498_v14, %v1996_v12 }
 0x260   :  { %v1478_v13 = vmul.f32 -1.442695, %v541_v6 }
 0x262   :  { %1541 = vpow2.f32 %v1478_v13 }
 0x263   :  { %v518_v38 = vpop.f32.mrf.mxu2 }
 0x264   :  { %v561_v40 = vadd.f32 %v518_v38, %v2000_v16  ;;  %v538_v17 = vpop.f32.mrf.mxu3 }
 0x265   :  { %v581_v28 = vadd.f32 %v2050_v34, %v538_v17 }
 0x266   :  { %v1479_v42 = vmul.f32 -1.442695, %v561_v40 }
 0x268   :  { %v1542_v44 = vpop.eup %1541  ;;  %1543 = vpow2.f32 %v1479_v42 }
 0x269   :  { %v545_v46 = vadd.f32 1.0, %v1542_v44 }
 0x26b   :  { %1545 = vrcp.f32 %v545_v46  ;;  %v557_v7 = vand.u32 2147483648, %v545_v46  ;;  %v555_v12 = vand.u32 2147483647, %v545_v46  ;;  %vm551_vm2 = vweird.f32 %v545_v46 }
 0x26d   :  { %v558_v16 = vor.u32 1.1754944e-38, %v557_v7  ;;  %vm556_vm4 = vcmp.eq.f32.partialorder %v555_v12, 8.507059e+37 }
 0x26e   :  { %v1544_v48 = vpop.eup %1543 }
 0x26f   :  { %v565_v58 = vadd.f32 1.0, %v1544_v48 }
 0x271   :  { %v1546_v63 = vpop.eup %1545  ;;  %1547 = vrcp.f32 %v565_v58  ;;  %v577_v32 = vand.u32 2147483648, %v565_v58  ;;  %v575_v8 = vand.u32 2147483647, %v565_v58  ;;  %vm571_vm6 = vweird.f32 %v565_v58 }
 0x272   :  { %v547_v0 = vmul.f32 %v1546_v63, %v545_v46  ;;  %vm552_vm1 = vweird.f32 %v1546_v63 }
 0x273   :  { %vm553_vm3 = vmor %vm551_vm2, %vm552_vm1  ;;  %v578_v13 = vor.u32 1.1754944e-38, %v577_v32  ;;  %vm576_vm9 = vcmp.eq.f32.partialorder %v575_v8, 8.507059e+37 }
 0x274   :  { %v548_v3 = vsub.f32 1.0, %v547_v0 }
 0x276   :  { %v549_v11 = vmul.f32 %v1546_v63, %v548_v3 }
 0x277   :  { %v1548_v15 = vpop.eup %1547 }
 0x278   :  { %v567_v19 = vmul.f32 %v1548_v15, %v565_v58  ;;  %v550_v21 = vadd.f32 %v1546_v63, %v549_v11  ;;  %vm572_vm5 = vweird.f32 %v1548_v15 }
 0x279   :  { %vm573_vm7 = vmor %vm571_vm6, %vm572_vm5 }
 0x27a   :  { %v568_v23 = vsub.f32 1.0, %v567_v19  ;;  %v554_v25 = vsel %vm553_vm3, %v1546_v63, %v550_v21 }
 0x27b   :  { %v559_v30 = vsel %vm556_vm4, %v558_v16, %v554_v25 }
 0x27c   :  { %v569_v9 = vmul.f32 %v1548_v15, %v568_v23  ;;  %v582_v36 = vmul.f32 %v581_v28, %v559_v30 }
 0x27e   :  { %v570_v14 = vadd.f32 %v1548_v15, %v569_v9  ;;  %v583_v6 = vadd.f32 %v582_v36, %v2003_v18 }
 0x280   :  { %v574_v38 = vsel %vm573_vm7, %v1548_v15, %v570_v14  ;;  %1549 = vtanh.f32 %v583_v6 }
 0x281   :  { %v579_v40 = vsel %vm576_vm9, %v578_v13, %v574_v38 }
 0x282   :  { %v585_v42 = vsub.f32 1.0, %v579_v40  ;;  %v587_v48 = vmul.f32 %v579_v40, %v2055_v10 }
 0x286   :  { %v1550_v44 = vpop.eup %1549 }
 0x287   :  { %v586_v46 = vmul.f32 %v1550_v44, %v585_v42 }
 0x289   :  { %v2080_v63 = vadd.f32 %v587_v48, %v586_v46 }
 0x28b   :  { %1480 = vmatmul.msk.f32.vlgmr.msrb.gmra.mxu1 %vm173_vm8, %v2080_v63  ;;  %1481 = vmatmul.msk.f32.vlgmr.msrb.gmra.mxu2 %vm173_vm8, %v2080_v63 }
 0x28c   :  { %1482 = vmatmul.msk.f32.vlgmr.msrb.gmra.mxu3 %vm173_vm8, %v2080_v63  ;;  %875 = vmatpush.msrb.mxu1 %v1886_v53 }
 0x28d   :  { %949 = vmatpush.msrb.mxu2 %v1863_v49  ;;  %969 = vmatpush.msrb.mxu3 %v1868_v50 }
 0x28e   :  { %876 = vmatpush.msrb.mxu1 %v1908_v57 }
 0x28f   :  { %950 = vmatpush.msrb.mxu2 %v1876_v51  ;;  %970 = vmatpush.msrb.mxu3 %v1881_v52 }
 0x290   :  { %877 = vmatpush.msrb.mxu1 %v1933_v62 }
 0x291   :  { %951 = vmatpush.msrb.mxu2 %v1898_v55  ;;  %971 = vmatpush.msrb.mxu3 %v1903_v56 }
 0x292   :  { %878 = vmatpush.msrb.mxu1 %v1959_v1 }
 0x293   :  { %952 = vmatpush.msrb.mxu2 %v1923_v60  ;;  %972 = vmatpush.msrb.mxu3 %v1928_v61 }
 0x308   :  { %v612_v18 = vpop.f32.mrf.mxu1 }
 0x309   :  { %v655_v10 = vadd.f32 %v612_v18, %v2005_v20 }
 0x30b   :  { %v1483_v58 = vmul.f32 -1.442695, %v655_v10 }
 0x30d   :  { %1551 = vpow2.f32 %v1483_v58 }
 0x30e   :  { %v632_v0 = vpop.f32.mrf.mxu2 }
 0x30f   :  { %v675_v3 = vadd.f32 %v632_v0, %v2007_v22  ;;  %v652_v30 = vpop.f32.mrf.mxu3 }
 0x310   :  { %v695_v14 = vadd.f32 %v2050_v34, %v652_v30 }
 0x311   :  { %v1484_v7 = vmul.f32 -1.442695, %v675_v3 }
 0x313   :  { %v1552_v11 = vpop.eup %1551  ;;  %1553 = vpow2.f32 %v1484_v7 }
 0x314   :  { %v659_v12 = vadd.f32 1.0, %v1552_v11 }
 0x316   :  { %1555 = vrcp.f32 %v659_v12  ;;  %v671_v23 = vand.u32 2147483648, %v659_v12  ;;  %v669_v20 = vand.u32 2147483647, %v659_v12  ;;  %vm665_vm11 = vweird.f32 %v659_v12 }
 0x318   :  { %v672_v22 = vor.u32 1.1754944e-38, %v671_v23  ;;  %vm670_vm13 = vcmp.eq.f32.partialorder %v669_v20, 8.507059e+37 }
 0x319   :  { %v1554_v15 = vpop.eup %1553 }
 0x31a   :  { %v679_v17 = vadd.f32 1.0, %v1554_v15 }
 0x31c   :  { %v1556_v19 = vpop.eup %1555  ;;  %1557 = vrcp.f32 %v679_v17  ;;  %v691_v40 = vand.u32 2147483648, %v679_v17  ;;  %v689_v42 = vand.u32 2147483647, %v679_v17  ;;  %vm685_vm15 = vweird.f32 %v679_v17 }
 0x31d   :  { %v661_v21 = vmul.f32 %v1556_v19, %v659_v12  ;;  %vm666_vm10 = vweird.f32 %v1556_v19 }
 0x31e   :  { %vm667_vm12 = vmor %vm665_vm11, %vm666_vm10  ;;  %v692_v18 = vor.u32 1.1754944e-38, %v691_v40  ;;  %vm690_vm1 = vcmp.eq.f32.partialorder %v689_v42, 8.507059e+37 }
 0x31f   :  { %v662_v16 = vsub.f32 1.0, %v661_v21 }
 0x321   :  { %v663_v25 = vmul.f32 %v1556_v19, %v662_v16 }
 0x322   :  { %v1558_v28 = vpop.eup %1557 }
 0x323   :  { %v681_v9 = vmul.f32 %v1558_v28, %v679_v17  ;;  %v664_v32 = vadd.f32 %v1556_v19, %v663_v25  ;;  %vm686_vm14 = vweird.f32 %v1558_v28 }
 0x324   :  { %vm687_vm0 = vmor %vm685_vm15, %vm686_vm14 }
 0x325   :  { %v682_v36 = vsub.f32 1.0, %v681_v9  ;;  %v668_v8 = vsel %vm667_vm12, %v1556_v19, %v664_v32 }
 0x326   :  { %v673_v6 = vsel %vm670_vm13, %v672_v22, %v668_v8 }
 0x327   :  { %v683_v13 = vmul.f32 %v1558_v28, %v682_v36  ;;  %v696_v38 = vmul.f32 %v695_v14, %v673_v6 }
 0x329   :  { %v697_v44 = vadd.f32 %v696_v38, %v2010_v24  ;;  %v684_v46 = vadd.f32 %v1558_v28, %v683_v13 }
 0x32b   :  { %1559 = vtanh.f32 %v697_v44  ;;  %v688_v48 = vsel %vm687_vm0, %v1558_v28, %v684_v46 }
 0x32c   :  { %v693_v10 = vsel %vm690_vm1, %v692_v18, %v688_v48 }
 0x32d   :  { %v699_v58 = vsub.f32 1.0, %v693_v10  ;;  %v701_v7 = vmul.f32 %v693_v10, %v2080_v63 }
 0x331   :  { %v1560_v0 = vpop.eup %1559 }
 0x332   :  { %v700_v3 = vmul.f32 %v1560_v0, %v699_v58 }
 0x334   :  { %v2105_v11 = vadd.f32 %v701_v7, %v700_v3 }
 0x336   :  { %1485 = vmatmul.msk.f32.vlgmr.msrb.gmra.mxu0 %vm173_vm8, %v2105_v11  ;;  %1486 = vmatmul.msk.f32.vlgmr.msra.gmra.mxu1 %vm173_vm8, %v2105_v11 }
 0x337   :  { %1487 = vmatmul.msk.f32.vlgmr.msra.gmra.mxu2 %vm173_vm8, %v2105_v11  ;;  %989 = vmatpush.msrb.mxu0 %v1886_v53 }
 0x338   :  { %1063 = vmatpush.msra.mxu1 %v1863_v49  ;;  %1083 = vmatpush.msra.mxu2 %v1868_v50 }
 0x339   :  { %990 = vmatpush.msrb.mxu0 %v1908_v57 }
 0x33a   :  { %1064 = vmatpush.msra.mxu1 %v1876_v51  ;;  %1084 = vmatpush.msra.mxu2 %v1881_v52 }
 0x33b   :  { %991 = vmatpush.msrb.mxu0 %v1933_v62 }
 0x33c   :  { %1065 = vmatpush.msra.mxu1 %v1898_v55  ;;  %1085 = vmatpush.msra.mxu2 %v1903_v56 }
 0x33d   :  { %992 = vmatpush.msrb.mxu0 %v1959_v1 }
 0x33e   :  { %1066 = vmatpush.msra.mxu1 %v1923_v60  ;;  %1086 = vmatpush.msra.mxu2 %v1928_v61 }
 0x3b3   :  { %v726_v24 = vpop.f32.mrf.mxu0  ;;  %v746_v63 = vpop.f32.mrf.mxu1 }
 0x3b4   :  { %v769_v12 = vadd.f32 %v726_v24, %v2012_v26  ;;  %v789_v15 = vadd.f32 %v746_v63, %v2014_v29 }
 0x3b6   :  { %v1488_v17 = vmul.f32 -1.442695, %v769_v12  ;;  %v1489_v19 = vmul.f32 -1.442695, %v789_v15 }
 0x3b8   :  { %1561 = vpow2.f32 %v1488_v17 }
 0x3b9   :  { %1563 = vpow2.f32 %v1489_v19 }
 0x3ba   :  { %v766_v14 = vpop.f32.mrf.mxu2 }
 0x3bb   :  { %v809_v40 = vadd.f32 %v2050_v34, %v766_v14 }
 0x3be   :  { %v1562_v21 = vpop.eup %1561 }
 0x3bf   :  { %v1564_v16 = vpop.eup %1563  ;;  %v773_v23 = vadd.f32 1.0, %v1562_v21 }
 0x3c0   :  { %v793_v25 = vadd.f32 1.0, %v1564_v16 }
 0x3c1   :  { %1565 = vrcp.f32 %v773_v23  ;;  %v785_v36 = vand.u32 2147483648, %v773_v23  ;;  %v783_v29 = vand.u32 2147483647, %v773_v23  ;;  %vm779_vm3 = vweird.f32 %v773_v23 }
 0x3c2   :  { %1567 = vrcp.f32 %v793_v25  ;;  %v805_v46 = vand.u32 2147483648, %v793_v25  ;;  %vm799_vm7 = vweird.f32 %v793_v25  ;;  %v803_v18 = vand.u32 2147483647, %v793_v25 }
 0x3c3   :  { %v786_v13 = vor.u32 1.1754944e-38, %v785_v36  ;;  %vm784_vm5 = vcmp.eq.f32.partialorder %v783_v29, 8.507059e+37 }
 0x3c4   :  { %v806_v0 = vor.u32 1.1754944e-38, %v805_v46  ;;  %vm804_vm10 = vcmp.eq.f32.partialorder %v803_v18, 8.507059e+37 }
 0x3c7   :  { %v1566_v20 = vpop.eup %1565 }
 0x3c8   :  { %v1568_v28 = vpop.eup %1567  ;;  %v775_v30 = vmul.f32 %v1566_v20, %v773_v23  ;;  %vm780_vm2 = vweird.f32 %v1566_v20 }
 0x3c9   :  { %v795_v9 = vmul.f32 %v1568_v28, %v793_v25  ;;  %vm781_vm4 = vmor %vm779_vm3, %vm780_vm2  ;;  %vm800_vm6 = vweird.f32 %v1568_v28 }
 0x3ca   :  { %v776_v32 = vsub.f32 1.0, %v775_v30  ;;  %vm801_vm9 = vmor %vm799_vm7, %vm800_vm6 }
 0x3cb   :  { %v796_v22 = vsub.f32 1.0, %v795_v9 }
 0x3cc   :  { %v777_v26 = vmul.f32 %v1566_v20, %v776_v32 }
 0x3cd   :  { %v797_v8 = vmul.f32 %v1568_v28, %v796_v22 }
 0x3ce   :  { %v778_v6 = vadd.f32 %v1566_v20, %v777_v26 }
 0x3cf   :  { %v798_v42 = vadd.f32 %v1568_v28, %v797_v8 }
 0x3d0   :  { %v782_v38 = vsel %vm781_vm4, %v1566_v20, %v778_v6 }
 0x3d1   :  { %v787_v44 = vsel %vm784_vm5, %v786_v13, %v782_v38  ;;  %v802_v58 = vsel %vm801_vm9, %v1568_v28, %v798_v42 }
 0x3d2   :  { %v810_v48 = vmul.f32 %v809_v40, %v787_v44  ;;  %v807_v3 = vsel %vm804_vm10, %v806_v0, %v802_v58 }
 0x3d3   :  { %v813_v7 = vsub.f32 1.0, %v807_v3  ;;  %v815_v12 = vmul.f32 %v807_v3, %v2105_v11 }
 0x3d4   :  { %v811_v10 = vadd.f32 %v810_v48, %v2017_v31 }
 0x3d6   :  { %1569 = vtanh.f32 %v811_v10 }
 0x3dc   :  { %v1570_v24 = vpop.eup %1569 }
 0x3dd   :  { %v814_v63 = vmul.f32 %v1570_v24, %v813_v7 }
 0x3df   :  { %v2130_v15 = vadd.f32 %v815_v12, %v814_v63 }
 0x3e1   :  { %1490 = vmatmul.msk.f32.vlgmr.msra.gmra.mxu3 %vm173_vm8, %v2130_v15  ;;  %1491 = vmatmul.msk.f32.vlgmr.msra.gmra.mxu0 %vm173_vm8, %v2130_v15 }
 0x3e2   :  { %1492 = vmatmul.msk.f32.vlgmr.msrb.gmra.mxu1 %vm173_vm8, %v2130_v15  ;;  %1103 = vmatpush.msra.mxu3 %v1886_v53 }
 0x3e3   :  { %1177 = vmatpush.msra.mxu0 %v1863_v49  ;;  %1197 = vmatpush.msrb.mxu1 %v1868_v50 }
 0x3e4   :  { %1104 = vmatpush.msra.mxu3 %v1908_v57 }
 0x3e5   :  { %1178 = vmatpush.msra.mxu0 %v1876_v51  ;;  %1198 = vmatpush.msrb.mxu1 %v1881_v52 }
 0x3e6   :  { %1105 = vmatpush.msra.mxu3 %v1933_v62 }
 0x3e7   :  { %1179 = vmatpush.msra.mxu0 %v1898_v55  ;;  %1199 = vmatpush.msrb.mxu1 %v1903_v56 }
 0x3e8   :  { %1106 = vmatpush.msra.mxu3 %v1959_v1 }
 0x3e9   :  { %1180 = vmatpush.msra.mxu0 %v1923_v60  ;;  %1200 = vmatpush.msrb.mxu1 %v1928_v61 }
 0x45e   :  { %v860_v49 = vpop.f32.mrf.mxu0 }
 0x45f   :  { %v903_v50 = vadd.f32 %v860_v49, %v2021_v35 }
 0x461   :  { %v1494_v31 = vmul.f32 -1.442695, %v903_v50 }
 0x463   :  { %1571 = vpow2.f32 %v1494_v31 }
 0x464   :  { %v840_v51 = vpop.f32.mrf.mxu3 }
 0x465   :  { %v883_v52 = vadd.f32 %v840_v51, %v2019_v33  ;;  %v880_v33 = vpop.f32.mrf.mxu1 }
 0x466   :  { %v923_v22 = vadd.f32 %v2050_v34, %v880_v33 }
 0x467   :  { %v1493_v11 = vmul.f32 -1.442695, %v883_v52 }
 0x469   :  { %v1572_v17 = vpop.eup %1571  ;;  %1573 = vpow2.f32 %v1493_v11 }
 0x46a   :  { %v907_v55 = vadd.f32 1.0, %v1572_v17 }
 0x46c   :  { %1575 = vrcp.f32 %v907_v55  ;;  %v919_v8 = vand.u32 2147483648, %v907_v55  ;;  %vm913_vm0 = vweird.f32 %v907_v55  ;;  %v917_v6 = vand.u32 2147483647, %v907_v55 }
 0x46e   :  { %v920_v40 = vor.u32 1.1754944e-38, %v919_v8  ;;  %vm918_vm2 = vcmp.eq.f32.partialorder %v917_v6, 8.507059e+37 }
 0x46f   :  { %v1574_v56 = vpop.eup %1573 }
 0x470   :  { %v887_v19 = vadd.f32 1.0, %v1574_v56 }
 0x472   :  { %1577 = vrcp.f32 %v887_v19  ;;  %v1576_v21 = vpop.eup %1575  ;;  %v899_v35 = vand.u32 2147483648, %v887_v19  ;;  %v897_v28 = vand.u32 2147483647, %v887_v19  ;;  %vm893_vm12 = vweird.f32 %v887_v19 }
 0x473   :  { %v909_v60 = vmul.f32 %v1576_v21, %v907_v55  ;;  %vm914_vm15 = vweird.f32 %v1576_v21 }
 0x474   :  { %v900_v32 = vor.u32 1.1754944e-38, %v899_v35  ;;  %vm898_vm14 = vcmp.eq.f32.partialorder %v897_v28, 8.507059e+37  ;;  %vm915_vm1 = vmor %vm913_vm0, %vm914_vm15 }
 0x475   :  { %v910_v23 = vsub.f32 1.0, %v909_v60 }
 0x477   :  { %v911_v30 = vmul.f32 %v1576_v21, %v910_v23 }
 0x478   :  { %v1578_v16 = vpop.eup %1577 }
 0x479   :  { %v889_v61 = vmul.f32 %v1578_v16, %v887_v19  ;;  %vm894_vm11 = vweird.f32 %v1578_v16  ;;  %v912_v26 = vadd.f32 %v1576_v21, %v911_v30 }
 0x47a   :  { %vm895_vm13 = vmor %vm893_vm12, %vm894_vm11 }
 0x47b   :  { %v890_v25 = vsub.f32 1.0, %v889_v61  ;;  %v916_v38 = vsel %vm915_vm1, %v1576_v21, %v912_v26 }
 0x47c   :  { %v921_v42 = vsel %vm918_vm2, %v920_v40, %v916_v38 }
 0x47d   :  { %v891_v20 = vmul.f32 %v1578_v16, %v890_v25  ;;  %v927_v44 = vsub.f32 1.0, %v921_v42  ;;  %v929_v18 = vmul.f32 %v921_v42, %v2130_v15 }
 0x47f   :  { %v892_v9 = vadd.f32 %v1578_v16, %v891_v20 }
 0x481   :  { %v896_v36 = vsel %vm895_vm13, %v1578_v16, %v892_v9 }
 0x482   :  { %v901_v29 = vsel %vm898_vm14, %v900_v32, %v896_v36 }
 0x483   :  { %v924_v14 = vmul.f32 %v923_v22, %v901_v29 }
 0x485   :  { %v925_v13 = vadd.f32 %v924_v14, %v2024_v37 }
 0x487   :  { %1579 = vtanh.f32 %v925_v13 }
 0x48d   :  { %v1580_v46 = vpop.eup %1579 }
 0x48e   :  { %v928_v48 = vmul.f32 %v1580_v46, %v927_v44 }
 0x490   :  { %v930_v10 = vadd.f32 %v929_v18, %v928_v48 }
 0x492   :  { %1495 = vmatmul.msk.f32.vlgmr.msrb.gmra.mxu2 %vm173_vm8, %v930_v10  ;;  %1496 = vmatmul.msk.f32.vlgmr.msrb.gmra.mxu3 %vm173_vm8, %v930_v10 }
 0x493   :  { %1497 = vmatmul.msk.f32.vlgmr.msrb.gmra.mxu0 %vm173_vm8, %v930_v10  ;;  %1217 = vmatpush.msrb.mxu2 %v1886_v53 }
 0x495   :  { %1218 = vmatpush.msrb.mxu2 %v1908_v57 }
 0x497   :  { %1219 = vmatpush.msrb.mxu2 %v1933_v62 }
 0x499   :  { %1220 = vmatpush.msrb.mxu2 %v1959_v1 }
 0x510   :  { %v994_v52 = vpop.f32.mrf.mxu0 }
 0x511   :  { %v1037_v56 = vadd.f32 %v2050_v34, %v994_v52 }
 0x515   :  { %v954_v37 = vpop.f32.mrf.mxu2  ;;  %v974_v58 = vpop.f32.mrf.mxu3 }
 0x516   :  { %v997_v0 = vadd.f32 %v954_v37, %v2026_v39  ;;  %v1017_v3 = vadd.f32 %v974_v58, %v2028_v41 }
 0x518   :  { %v1498_v7 = vmul.f32 -1.442695, %v997_v0  ;;  %v1499_v24 = vmul.f32 -1.442695, %v1017_v3 }
 0x51a   :  { %1581 = vpow2.f32 %v1498_v7 }
 0x51b   :  { %1583 = vpow2.f32 %v1499_v24 }
 0x520   :  { %v1582_v63 = vpop.eup %1581 }
 0x521   :  { %v1584_v12 = vpop.eup %1583  ;;  %v1001_v15 = vadd.f32 1.0, %v1582_v63 }
 0x522   :  { %v1021_v53 = vadd.f32 1.0, %v1584_v12 }
 0x523   :  { %1585 = vrcp.f32 %v1001_v15  ;;  %v1013_v31 = vand.u32 2147483648, %v1001_v15  ;;  %v1011_v41 = vand.u32 2147483647, %v1001_v15  ;;  %vm1007_vm4 = vweird.f32 %v1001_v15 }
 0x524   :  { %1587 = vrcp.f32 %v1021_v53  ;;  %v1033_v61 = vand.u32 2147483648, %v1021_v53  ;;  %vm1027_vm9 = vweird.f32 %v1021_v53  ;;  %v1031_v23 = vand.u32 2147483647, %v1021_v53 }
 0x525   :  { %v1014_v55 = vor.u32 1.1754944e-38, %v1013_v31  ;;  %vm1012_vm6 = vcmp.eq.f32.partialorder %v1011_v41, 8.507059e+37 }
 0x526   :  { %v1034_v20 = vor.u32 1.1754944e-38, %v1033_v61  ;;  %vm1032_vm11 = vcmp.eq.f32.partialorder %v1031_v23, 8.507059e+37 }
 0x529   :  { %v1586_v57 = vpop.eup %1585 }
 0x52a   :  { %v1588_v62 = vpop.eup %1587  ;;  %v1003_v49 = vmul.f32 %v1586_v57, %v1001_v15  ;;  %vm1008_vm3 = vweird.f32 %v1586_v57 }
 0x52b   :  { %v1023_v1 = vmul.f32 %v1588_v62, %v1021_v53  ;;  %vm1009_vm5 = vmor %vm1007_vm4, %vm1008_vm3  ;;  %vm1028_vm7 = vweird.f32 %v1588_v62 }
 0x52c   :  { %v1004_v50 = vsub.f32 1.0, %v1003_v49  ;;  %vm1029_vm10 = vmor %vm1027_vm9, %vm1028_vm7 }
 0x52d   :  { %v1024_v51 = vsub.f32 1.0, %v1023_v1 }
 0x52e   :  { %v1005_v39 = vmul.f32 %v1586_v57, %v1004_v50 }
 0x52f   :  { %v1025_v11 = vmul.f32 %v1588_v62, %v1024_v51 }
 0x530   :  { %v1006_v17 = vadd.f32 %v1586_v57, %v1005_v39 }
 0x531   :  { %v1026_v60 = vadd.f32 %v1588_v62, %v1025_v11 }
 0x532   :  { %v1010_v19 = vsel %vm1009_vm5, %v1586_v57, %v1006_v17 }
 0x533   :  { %v1015_v21 = vsel %vm1012_vm6, %v1014_v55, %v1010_v19  ;;  %v1030_v35 = vsel %vm1029_vm10, %v1588_v62, %v1026_v60  ;;  %v1276_v60 = vld [vmem:[%s2219_s7 + $0x18] sm:$0xff] }
 0x534   :  { %v1038_v16 = vmul.f32 %v1037_v56, %v1015_v21  ;;  %v1035_v28 = vsel %vm1032_vm11, %v1034_v20, %v1030_v35  ;;  %1296 = vmatpush.msrb.mxu3 %v1276_v60  ;;  %v1617_v60 = vld [vmem:[%s2213_s1] sm:$0xff] }
 0x535   :  { %v1041_v30 = vsub.f32 1.0, %v1035_v28  ;;  %v1043_v32 = vmul.f32 %v1035_v28, %v930_v10 }
 0x536   :  { %v1039_v25 = vadd.f32 %v1038_v16, %v2031_v43  ;;  %v1275_v16 = vld [vmem:[%s2219_s7 + $0x10] sm:$0xff] }
 0x537   :  { %1297 = vmatpush.msrb.mxu3 %v1275_v16 }
 0x538   :  { %1589 = vtanh.f32 %v1039_v25 }
 0x53e   :  { %v1590_v33 = vpop.eup %1589 }
 0x53f   :  { %v1042_v9 = vmul.f32 %v1590_v33, %v1041_v30 }
 0x541   :  { %v1044_v22 = vadd.f32 %v1043_v32, %v1042_v9 }
 0x543   :  { %1500 = vmatmul.msk.f32.vlgmr.msra.gmra.mxu1 %vm173_vm8, %v1044_v22  ;;  %1501 = vmatmul.msk.f32.vlgmr.msra.gmra.mxu2 %vm173_vm8, %v1044_v22 }
 0x544   :  { %1502 = vmatmul.msk.f32.vlgmr.msra.gmra.mxu3 %vm173_vm8, %v1044_v22 }
 0x5c0   :  { %v1068_v36 = vpop.f32.mrf.mxu1 }
 0x5c1   :  { %v1111_v26 = vadd.f32 %v1068_v36, %v2033_v45 }
 0x5c3   :  { %v1503_v43 = vmul.f32 -1.442695, %v1111_v26 }
 0x5c5   :  { %1591 = vpow2.f32 %v1503_v43 }
 0x5c6   :  { %v1088_v29 = vpop.f32.mrf.mxu2 }
 0x5c7   :  { %v1131_v8 = vadd.f32 %v1088_v29, %v2035_v47  ;;  %v1108_v37 = vpop.f32.mrf.mxu3 }
 0x5c8   :  { %v1151_v24 = vadd.f32 %v2050_v34, %v1108_v37 }
 0x5c9   :  { %v1504_v14 = vmul.f32 -1.442695, %v1131_v8 }
 0x5cb   :  { %v1592_v6 = vpop.eup %1591  ;;  %1593 = vpow2.f32 %v1504_v14 }
 0x5cc   :  { %v1115_v13 = vadd.f32 1.0, %v1592_v6 }
 0x5ce   :  { %1595 = vrcp.f32 %v1115_v13  ;;  %v1127_v48 = vand.u32 2147483648, %v1115_v13  ;;  %v1125_v45 = vand.u32 2147483647, %v1115_v13  ;;  %vm1121_vm13 = vweird.f32 %v1115_v13 }
 0x5d0   :  { %v1128_v47 = vor.u32 1.1754944e-38, %v1127_v48  ;;  %vm1126_vm15 = vcmp.eq.f32.partialorder %v1125_v45, 8.507059e+37 }
 0x5d1   :  { %v1594_v38 = vpop.eup %1593 }
 0x5d2   :  { %v1135_v40 = vadd.f32 1.0, %v1594_v38 }
 0x5d4   :  { %v1596_v42 = vpop.eup %1595  ;;  %1597 = vrcp.f32 %v1135_v40  ;;  %v1147_v15 = vand.u32 2147483648, %v1135_v40  ;;  %v1145_v57 = vand.u32 2147483647, %v1135_v40  ;;  %vm1141_vm1 = vweird.f32 %v1135_v40 }
 0x5d5   :  { %v1117_v44 = vmul.f32 %v1596_v42, %v1115_v13  ;;  %vm1122_vm12 = vweird.f32 %v1596_v42 }
 0x5d6   :  { %vm1123_vm14 = vmor %vm1121_vm13, %vm1122_vm12  ;;  %v1148_v1 = vor.u32 1.1754944e-38, %v1147_v15  ;;  %vm1146_vm3 = vcmp.eq.f32.partialorder %v1145_v57, 8.507059e+37 }
 0x5d7   :  { %v1118_v46 = vsub.f32 1.0, %v1117_v44 }
 0x5d9   :  { %v1119_v18 = vmul.f32 %v1596_v42, %v1118_v46 }
 0x5da   :  { %v1598_v10 = vpop.eup %1597 }
 0x5db   :  { %v1137_v58 = vmul.f32 %v1598_v10, %v1135_v40  ;;  %v1120_v0 = vadd.f32 %v1596_v42, %v1119_v18  ;;  %vm1142_vm0 = vweird.f32 %v1598_v10 }
 0x5dc   :  { %vm1143_vm2 = vmor %vm1141_vm1, %vm1142_vm0 }
 0x5dd   :  { %v1138_v3 = vsub.f32 1.0, %v1137_v58  ;;  %v1124_v7 = vsel %vm1123_vm14, %v1596_v42, %v1120_v0 }
 0x5de   :  { %v1129_v63 = vsel %vm1126_vm15, %v1128_v47, %v1124_v7  ;;  %vm1326_vm15 = vcmask 7168  }
 0x5df   :  { %v1139_v12 = vmul.f32 %v1598_v10, %v1138_v3  ;;  %v1152_v53 = vmul.f32 %v1151_v24, %v1129_v63  ;;  %v1530_v3 = vld [vmem:[%s2220_s8] ss:$0 sm:$0xff] }
 0x5e1   :  { %v1140_v62 = vadd.f32 %v1598_v10, %v1139_v12  ;;  %v1153_v49 = vadd.f32 %v1152_v53, %v2038_v54 }
 0x5e3   :  { %v1144_v50 = vsel %vm1143_vm2, %v1598_v10, %v1140_v62  ;;  %1599 = vtanh.f32 %v1153_v49 }
 0x5e4   :  { %v1149_v31 = vsel %vm1146_vm3, %v1148_v1, %v1144_v50 }
 0x5e5   :  { %v1155_v51 = vsub.f32 1.0, %v1149_v31  ;;  %v1157_v52 = vmul.f32 %v1149_v31, %v1044_v22  ;;  %v1318_v31 = vpop.permute.xlu1 %1317 }
 0x5e6   :  { %vm1319_vm14 = vcmp.eq.s32.totalorder %v1814_v27, %v1318_v31 }
 0x5e9   :  { %v1600_v39 = vpop.eup %1599 }
 0x5ea   :  { %v1156_v41 = vmul.f32 %v1600_v39, %v1155_v51  ;;  %v1511_v39 = vsel %vm1319_vm14, 1.0, %v1674_v5 }
 0x5ec   :  { %v1158_v11 = vadd.f32 %v1157_v52, %v1156_v41 }
 0x5ee   :  { %1505 = vmatmul.msk.f32.vlgmr.msra.gmra.mxu0 %vm173_vm8, %v1158_v11  ;;  %1506 = vmatmul.msk.f32.vlgmr.msrb.gmra.mxu1 %vm173_vm8, %v1158_v11 }
 0x5ef   :  { %1507 = vmatmul.msk.f32.vlgmr.msrb.gmra.mxu2 %vm173_vm8, %v1158_v11 }
 0x66b   :  { %v1182_v17 = vpop.f32.mrf.mxu0  ;;  %v1202_v55 = vpop.f32.mrf.mxu1 }
 0x66c   :  { %v1225_v54 = vadd.f32 %v1182_v17, %v2040_v59  ;;  %v1245_v56 = vadd.f32 %v1202_v55, %v2042_v2  ;;  %v1274_v59 = vld [vmem:[%s2219_s7 + $0x8] sm:$0xff]  ;;  %v1273_v2 = vld [vmem:[%s2219_s7] sm:$0xff] }
 0x66d   :  { %1298 = vmatpush.msrb.mxu3 %v1274_v59 }
 0x66e   :  { %v1508_v19 = vmul.f32 -1.442695, %v1225_v54  ;;  %v1509_v21 = vmul.f32 -1.442695, %v1245_v56 }
 0x66f   :  { %1299 = vmatpush.msrb.mxu3 %v1273_v2 }
 0x670   :  { %1601 = vpow2.f32 %v1508_v19 }
 0x671   :  { %1603 = vpow2.f32 %v1509_v21 }
 0x672   :  { %v1222_v29 = vpop.f32.mrf.mxu2 }
 0x673   :  { %v1265_v13 = vadd.f32 %v2050_v34, %v1222_v29 }
 0x676   :  { %v1602_v61 = vpop.eup %1601 }
 0x677   :  { %v1604_v23 = vpop.eup %1603  ;;  %v1229_v25 = vadd.f32 1.0, %v1602_v61 }
 0x678   :  { %v1249_v35 = vadd.f32 1.0, %v1604_v23 }
 0x679   :  { %1605 = vrcp.f32 %v1229_v25  ;;  %v1241_v22 = vand.u32 2147483648, %v1229_v25  ;;  %v1239_v26 = vand.u32 2147483647, %v1229_v25  ;;  %vm1235_vm5 = vweird.f32 %v1229_v25 }
 0x67a   :  { %1607 = vrcp.f32 %v1249_v35  ;;  %v1261_v42 = vand.u32 2147483648, %v1249_v35  ;;  %vm1255_vm10 = vweird.f32 %v1249_v35  ;;  %v1259_v46 = vand.u32 2147483647, %v1249_v35 }
 0x67b   :  { %v1242_v14 = vor.u32 1.1754944e-38, %v1241_v22  ;;  %vm1240_vm7 = vcmp.eq.f32.partialorder %v1239_v26, 8.507059e+37 }
 0x67c   :  { %v1262_v45 = vor.u32 1.1754944e-38, %v1261_v42  ;;  %vm1260_vm12 = vcmp.eq.f32.partialorder %v1259_v46, 8.507059e+37 }
 0x67f   :  { %v1606_v20 = vpop.eup %1605 }
 0x680   :  { %v1608_v28 = vpop.eup %1607  ;;  %v1231_v30 = vmul.f32 %v1606_v20, %v1229_v25  ;;  %vm1236_vm4 = vweird.f32 %v1606_v20  ;;  %v1676_v25 = vmov 8.0  }
 0x681   :  { %v1251_v33 = vmul.f32 %v1608_v28, %v1249_v35  ;;  %vm1237_vm6 = vmor %vm1235_vm5, %vm1236_vm4  ;;  %vm1256_vm9 = vweird.f32 %v1608_v28 }
 0x682   :  { %v1232_v9 = vsub.f32 1.0, %v1231_v30  ;;  %vm1257_vm11 = vmor %vm1255_vm10, %vm1256_vm9 }
 0x683   :  { %v1252_v32 = vsub.f32 1.0, %v1251_v33 }
 0x684   :  { %v1233_v36 = vmul.f32 %v1606_v20, %v1232_v9 }
 0x685   :  { %v1253_v43 = vmul.f32 %v1608_v28, %v1252_v32 }
 0x686   :  { %v1234_v8 = vadd.f32 %v1606_v20, %v1233_v36 }
 0x687   :  { %v1254_v38 = vadd.f32 %v1608_v28, %v1253_v43 }
 0x688   :  { %v1238_v6 = vsel %vm1237_vm6, %v1606_v20, %v1234_v8 }
 0x689   :  { %v1243_v40 = vsel %vm1240_vm7, %v1242_v14, %v1238_v6  ;;  %v1258_v18 = vsel %vm1257_vm11, %v1608_v28, %v1254_v38 }
 0x68a   :  { %v1266_v44 = vmul.f32 %v1265_v13, %v1243_v40  ;;  %v1263_v10 = vsel %vm1260_vm12, %v1262_v45, %v1258_v18 }
 0x68b   :  { %v1269_v37 = vsub.f32 1.0, %v1263_v10  ;;  %v1271_v47 = vmul.f32 %v1263_v10, %v1158_v11 }
 0x68c   :  { %v1267_v48 = vadd.f32 %v1266_v44, %v2045_v4 }
 0x68e   :  { %1609 = vtanh.f32 %v1267_v48 }
 0x694   :  { %v1610_v58 = vpop.eup %1609 }
 0x695   :  { %v1270_v0 = vmul.f32 %v1610_v58, %v1269_v37 }
 0x697   :  { %v1272_v34 = vadd.f32 %v1271_v47, %v1270_v0 }
 0x699   :  { %1510 = vmatmul.msk.f32.vlgmr.msrb.gmra.mxu3 %vm173_vm8, %v1272_v34 }
 0x71c   :  { %v1301_v7 = vpop.f32.mrf.mxu3 }
 0x71d   :  { %v1302_v24 = vadd.f32 %v1530_v3, %v1301_v7 }
 0x71f   :  { %1304 = vst [vmem:[#allocation3] sm:$0xff] %v1302_v24  ;;  %1306 = vmax.xlane.f32.xlu2 %v1302_v24  ;;  %v1322_v41 = vmul.f32 %v1511_v39, %v1302_v24 }
 0x720   :  { %1398 = dma.vmem_to_hbm [thread:$0]  %s1394_s23, 128, %s1396_s26, [#allocation4]  }
 0x792   :  { %v1307_v4 = vpop.xlane.xlu2 %1306 }
 0x793   :  { %v1308_v63 = vsub.f32 %v1302_v24, %v1307_v4  ;;  %vm1348_vm13 = vcmp.eq.f32.partialorder %v1302_v24, %v1307_v4 }
 0x794   :  { %v1349_v12 = vsel %vm1348_vm13, %v1814_v27, 128 }
 0x795   :  { %v1309_v15 = vmul.f32 1.442695, %v1308_v63  ;;  %v1351_v53 = vshra.s32 %v1349_v12, 16  ;;  %v1350_v49 = vand.u32 65535, %v1349_v12 }
 0x797   :  { %1611 = vpow2.f32 %v1309_v15  ;;  %v1353_v57 = vcvt.s32.f32 %v1351_v53  ;;  %v1352_v50 = vcvt.s32.f32 %v1350_v49 }
 0x799   :  { %1354 = vmin.xlane.f32.xlu0 %v1353_v57 }
 0x79d   :  { %v1612_v62 = vpop.eup %1611 }
 0x79e   :  { %1311 = vadd.xlane.f32.xlu1 %v1612_v62 }
 0x80c   :  { %v1355_v1 = vpop.xlane.xlu0 %1354 }
 0x80d   :  { %vm1356_vm8 = vcmp.eq.f32.partialorder %v1353_v57, %v1355_v1  ;;  %v1361_v11 = vcvt.f32.s32 %v1355_v1 }
 0x80e   :  { %v1357_v51 = vsel %vm1356_vm8, %v1352_v50, inf }
 0x80f   :  { %1358 = vmin.xlane.f32.xlu2 %v1357_v51  ;;  %v1362_v54 = vshll.u32 %v1361_v11, 16 }
 0x811   :  { %v1312_v52 = vpop.xlane.xlu1 %1311 }
 0x812   :  { %1613 = vlog2.f32 %v1312_v52 }
 0x813   :  { %1615 = vrcp.f32 %v1676_v25 }
 0x817   :  { %1323 = vadd.xlane.f32.xlu2 %v1322_v41 }
 0x818   :  { %v1614_v17 = vpop.eup %1613 }
 0x819   :  { %v1314_v19 = vmul.f32 0.6931472, %v1614_v17  ;;  %v1616_v35 = vpop.eup %1615 }
 0x81a   :  { %vm1342_vm1 = vweird.f32 %v1616_v35 }
 0x81b   :  { %v1315_v59 = vadd.f32 %v1314_v19, %v1307_v4 }
 0x882   :  { %v1359_v55 = vpop.xlane.xlu2 %1358 }
 0x883   :  { %v1360_v56 = vcvt.f32.s32 %v1359_v55 }
 0x885   :  { %v1363_v21 = vadd.s32 %v1362_v54, %v1360_v56 }
 0x887   :  { %vm1364_vm0 = vcmp.eq.s32.totalorder %v1363_v21, %v1617_v60 }
 0x888   :  { %v1512_v27 = vsel %vm1364_vm0, 1.0, %v1674_v5  ;;  %v1338_v5 = vmul.f32 8.0, %v1616_v35 }
 0x889   :  { %v1367_v16 = vsel %vm1326_vm15, %v1512_v27, 0.0 }
 0x88a   :  { %1368 = vadd.xlane.f32.xlu2 %v1367_v16  ;;  %v1324_v61 = vpop.xlane.xlu2 %1323  ;;  %v1339_v33 = vsub.f32 1.0, %v1338_v5 }
 0x88b   :  { %v1325_v2 = vsub.f32 %v1315_v59, %v1324_v61 }
 0x88c   :  { %v1340_v26 = vmul.f32 %v1616_v35, %v1339_v33 }
 0x88d   :  { %v1327_v23 = vsel %vm1326_vm15, %v1325_v2, 0.0 }
 0x88e   :  { %1328 = vadd.xlane.f32.xlu0 %v1327_v23  ;;  %v1341_v14 = vadd.f32 %v1616_v35, %v1340_v26 }
 0x890   :  { %v1343_v40 = vsel %vm1342_vm1, %v1616_v35, %v1341_v14 }
 0x8fd   :  { %v1369_v20 = vpop.xlane.xlu2 %1368 }
 0x8fe   :  { %v1370_v28 = vrot.slane %v1369_v20, 4 }
 0x900   :  { %v1371_v30 = vadd.f32 %v1370_v28, %v1369_v20 }
 0x901   :  { %v1329_v9 = vpop.xlane.xlu0 %1328 }
 0x902   :  { %v1372_v32 = vrot.slane %v1371_v30, 2  ;;  %v1330_v22 = vrot.slane %v1329_v9, 4 }
 0x904   :  { %v1331_v36 = vadd.f32 %v1330_v22, %v1329_v9  ;;  %v1373_v43 = vadd.f32 %v1372_v32, %v1371_v30 }
 0x906   :  { %v1332_v29 = vrot.slane %v1331_v36, 2  ;;  %v1374_v13 = vrot.slane %v1373_v43, 1 }
 0x908   :  { %v1333_v8 = vadd.f32 %v1332_v29, %v1331_v36  ;;  %v1375_v42 = vadd.f32 %v1374_v13, %v1373_v43 }
 0x90a   :  { %v1334_v6 = vrot.slane %v1333_v8, 1 }
 0x90c   :  { %v1335_v38 = vadd.f32 %v1334_v6, %v1333_v8 }
 0x90e   :  { %1513 = vpush %v1335_v38 }
 0x90f   :  { %1515 = vpush %v1343_v40 }
 0x910   :  { %1517 = vpush %v1375_v42 }
 0x93f   :  { %s1514_s2 = spop %1513 }
 0x940   :  { %s1516_s12 = spop %1515 }
 0x941   :  { %s1345_s4 = smul.f32 %s1516_s12, %s1514_s2  ;;  %s1518_s13 = spop %1517 }
 0x942   :  { %s1385_s5 = smul.f32 %s1518_s13, %s1516_s12 }
 0x943   :  { %1347 = sst [smem:[#allocation6]] %s1345_s4 }
 0x944   :  { %1387 = sst [smem:[#allocation7]] %s1385_s5 }
 0x945   :  { %1407 = dma.smem_to_hbm %s1677_s14, 16, %s1405_s27, [#allocation5]  }
 0x946   :  { %1416 = dma.smem_to_hbm %s1678_s6, 16, %s1414_s30, [#allocation8]  }
 0x947   :  { %1666 = dma.done.wait [#allocation4], 128  }
 0x948   :  { %1667 = vsyncadd [#allocation4], 4294967168 }
 0x949   :  { %1668 = dma.done.wait [#allocation5], 16  }
 0x94a   :  { %1669 = vsyncadd [#allocation5], 4294967280 }
 0x94b   :  { %1670 = dma.done.wait [#allocation8], 16  }
 0x94c   :  { %1671 = vsyncadd [#allocation8], 4294967280 }
 0x94d   :  { %1429 = sfence }
 0x94e   :  { %1430 = vsyncpa [#allocation4], 1 }
 0x94f   :  { %1431 = vsyncpa [#allocation5], 1 }
 0x950   :  { %1432 = vsyncpa [#allocation8], 1 }

</bundles_post_ra>
